<compile_context>
chip_gen: v5e
topology: v5e:2x2
jax: 0.10.0
libtpu: 0.0.40
codegen_flags: <defaults>
</compile_context>

<pallas_src>
import functools

import jax
import jax.numpy as jnp
from jax.experimental import pallas as pl
from jax.experimental.pallas import tpu as pltpu

EPS = 1e-5    # nn.BatchNorm2d default eps
LANE = 128    # TPU lane width: channel axes are zero-padded to a multiple of this


def _ceil_to(x, m):
    return (x + m - 1) // m * m


def _row_tile(h_o, target=8):
    """Largest divisor of h_o that is <= target (output-row tile height)."""
    for t in range(min(target, h_o), 0, -1):
        if h_o % t == 0:
            return t
    return h_o


def _sl(start, size, stride):
    """(Possibly strided) window along one ref axis."""
    return pl.ds(start, size) if stride == 1 else pl.ds(start, size, stride)


def _vmem_limit_bytes():
    """Generation-aware scoped-VMEM budget: ~75% of physical, capped at 100 MiB."""
    cap = 64 * 1024 * 1024
    try:
        cap = int(pltpu.get_tpu_info().vmem_capacity_bytes)
    except Exception:
        pass
    if cap < (32 << 20):
        cap = 64 << 20
    return min(cap * 3 // 4, 100 * 1024 * 1024)


# ------------------------------- Pallas kernels -------------------------------

def _accum_conv3x3(load_row_taps, w_ref, h_t, w_o):
    """3x3 conv as 3 tap-grouped MXU matmuls (one per kernel row kh, K = 3*Cin_p)."""
    cout = w_ref.shape[-1]
    acc = jnp.zeros((h_t * w_o, cout), jnp.float32)
    for kh in range(3):
        p = load_row_taps(kh)                               # (h_t, w_o, 3*Cin_p)
        p = p.reshape(h_t * w_o, p.shape[-1]).astype(jnp.bfloat16)
        acc = acc + jnp.dot(p, w_ref[kh], preferred_element_type=jnp.float32)
    return acc


def _store_moments(st_ref, acc):
    """Partial BN moments for this (image, row-tile): [sum, sum of squares] (f32).
    TODO(synk): E[y^2]-E[y]^2 can lose precision at very large counts; a centered
    accumulation would be more robust, not needed at these scales."""
    s = jnp.sum(acc, axis=0, keepdims=True)
    q = jnp.sum(acc * acc, axis=0, keepdims=True)
    st_ref[...] = jnp.concatenate([s, q], axis=0).reshape(st_ref.shape)


def _stage1_kernel(x_ref, w1_ref, *rest, stride, has_ds):
    """conv1 (3x3, stride) [+ fused 1x1 downsample conv] on one output row-tile.

    x_ref holds the whole spatially padded bf16 input plane of the current image
    (grid-invariant along the row axis -> DMA'd once per image)."""
    if has_ds:
        wd_ref, y1_ref, idp_ref, st1_ref, std_ref = rest
    else:
        y1_ref, st1_ref = rest
    th, w_o, cp = y1_ref.shape[1], y1_ref.shape[2], y1_ref.shape[3]
    r = pl.program_id(1)
    row0 = pl.multiple_of(r * (th * stride), th * stride)   # padded-input row of tap kh=0

    def row_taps(kh):
        return jnp.concatenate(
            [x_ref[0, _sl(row0 + kh, th, stride), _sl(kw, w_o, stride), :]
             for kw in range(3)], axis=-1)

    acc = _accum_conv3x3(row_taps, w1_ref, th, w_o)
    y1_ref[0] = acc.reshape(th, w_o, cp).astype(y1_ref.dtype)
    _store_moments(st1_ref, acc)

    if has_ds:
        # 1x1 stride-s downsample conv reuses the resident padded plane (center taps):
        # x[s*i, s*j] == xp[s*i + 1, s*j + 1]
        xs = x_ref[0, _sl(row0 + 1, th, stride), _sl(1, w_o, stride), :]
        xs = xs.reshape(th * w_o, xs.shape[-1]).astype(jnp.bfloat16)
        accd = jnp.dot(xs, wd_ref[...], preferred_element_type=jnp.float32)
        idp_ref[0] = accd.reshape(th, w_o, cp).astype(idp_ref.dtype)
        _store_moments(std_ref, accd)


def _bn1_conv2_kernel(y1_ref, a1_ref, b1_ref, w2_ref, y2_ref, st2_ref, pad_ref):
    """BN1 (affine) + ReLU + 1-pixel zero halo + conv2 (3x3, s=1) on one row-tile.

    y1_ref holds the whole bf16 y1 plane of the current image (grid-invariant along
    the row axis); the two halo rows are re-normalized here (cheap VPU work)."""
    th, w_o, cp = y2_ref.shape[1], y2_ref.shape[2], y2_ref.shape[3]
    r = pl.program_id(1)
    n_rt = pl.num_programs(1)
    row0 = pl.multiple_of(r * th, th)
    a1 = a1_ref[...]                                        # (1, cp), hoisted loads
    b1 = b1_ref[...]

    def bn_relu(rows):                                      # (k, w_o, cp) bf16 -> bf16
        k = rows.shape[0]
        v = rows.reshape(k * w_o, cp).astype(jnp.float32)
        v = jnp.maximum(v * a1 + b1, 0.0)
        return v.reshape(k, w_o, cp).astype(pad_ref.dtype)

    # Zero only the 1-pixel border of the halo scratch (interior is fully overwritten).
    pad_ref[0:1, :, :] = jnp.zeros((1, w_o + 2, cp), pad_ref.dtype)
    pad_ref[th + 1:th + 2, :, :] = jnp.zeros((1, w_o + 2, cp), pad_ref.dtype)
    pad_ref[:, 0:1, :] = jnp.zeros((th + 2, 1, cp), pad_ref.dtype)
    pad_ref[:, w_o + 1:w_o + 2, :] = jnp.zeros((th + 2, 1, cp), pad_ref.dtype)

    # Interior rows of this tile.
    pad_ref[1:th + 1, 1:w_o + 1, :] = bn_relu(y1_ref[0, pl.ds(row0, th), :, :])

    # Halo rows borrowed from the neighbouring tiles (stay zero at the image boundary).
    @pl.when(r > 0)
    def _():
        pad_ref[0:1, 1:w_o + 1, :] = bn_relu(y1_ref[0, pl.ds(row0 - 1, 1), :, :])

    @pl.when(r < n_rt - 1)
    def _():
        pad_ref[th + 1:th + 2, 1:w_o + 1, :] = bn_relu(y1_ref[0, pl.ds(row0 + th, 1), :, :])

    def row_taps(kh):
        return jnp.concatenate(
            [pad_ref[pl.ds(kh, th), pl.ds(kw, w_o), :] for kw in range(3)], axis=-1)

    acc = _accum_conv3x3(row_taps, w2_ref, th, w_o)
    y2_ref[0] = acc.reshape(th, w_o, cp).astype(y2_ref.dtype)
    _store_moments(st2_ref, acc)


def _bn2_add_relu_kernel(y2_ref, id_ref, a2_ref, b2_ref, ai_ref, bi_ref, o_ref):
    """relu(BN2(y2) + BN_id(identity)); identity affine is (1, 0) when no downsample.
    Emits only the real (un-padded) output channels."""
    th, w_o, cp = y2_ref.shape[1], y2_ref.shape[2], y2_ref.shape[3]
    c_out = o_ref.shape[3]
    y2 = y2_ref[0].reshape(th * w_o, cp).astype(jnp.float32)
    idt = id_ref[0].reshape(th * w_o, cp).astype(jnp.float32)
    out = y2 * a2_ref[...] + b2_ref[...] + idt * ai_ref[...] + bi_ref[...]
    out = jnp.maximum(out, 0.0).reshape(th, w_o, cp)
    o_ref[0] = out[:, :, :c_out]


# --------------------------------- JAX glue -----------------------------------

def _prep_w3x3(w, cin_p, cout_p):
    """OIHW 3x3 weight -> (3, 3*Cin_p, Cout_p) bf16; K ordered (kw, cin) to match the
    kernels' kw-concatenated operand slices."""
    c_out, c_in = w.shape[0], w.shape[1]
    wm = jnp.transpose(w, (2, 3, 1, 0))                           # (kh, kw, cin, cout)
    wm = jnp.pad(wm, ((0, 0), (0, 0), (0, cin_p - c_in), (0, cout_p - c_out)))
    return wm.reshape(3, 3 * cin_p, cout_p).astype(jnp.bfloat16)


def _prep_w1x1(w, cin_p, cout_p):
    """OIHW 1x1 conv weight -> (Cin_p, Cout_p) bf16."""
    c_out, c_in = w.shape[0], w.shape[1]
    wm = jnp.pad(w[:, :, 0, 0].T, ((0, cin_p - c_in), (0, cout_p - c_out)))
    return wm.astype(jnp.bfloat16)


def _bn_affine(st, gamma_p, beta_p, count):
    """Fold global batch moments + gamma/beta into per-channel scale/shift (training BN)."""
    s = jnp.sum(st, axis=(0, 1))                                  # (2, C)
    mean = s[0] / count
    var = s[1] / count - mean * mean
    a = gamma_p * jax.lax.rsqrt(var + EPS)
    b = beta_p - mean * a
    return a.reshape(1, -1), b.reshape(1, -1)


def basic_block_forward(x, params, stride=1):
    """x: (N, H, W, C_in) float32 NHWC. Returns (N, H_out, W_out, C_out) float32."""
    n, h, w, c_in = x.shape
    c_out = params["w1"].shape[0]
    cin_p, cout_p = _ceil_to(c_in, LANE), _ceil_to(c_out, LANE)
    h_o = (h + 2 - 3) // stride + 1
    w_o = (w + 2 - 3) // stride + 1
    count = float(n * h_o * w_o)
    ds = params.get("downsample")
    has_ds = ds is not None
    th = _row_tile(h_o)
    n_rt = h_o // th
    grid = (n, n_rt)

    cparams = pltpu.CompilerParams(
        dimension_semantics=("parallel", "parallel"),
        vmem_limit_bytes=_vmem_limit_bytes(),
    )
    # Note: invariant weight / affine blocks are left to the default pipeliner; their
    # double-buffered footprint is negligible at these channel counts.

    # Host-side layout prep: lane-pad channels, add the 1-pixel spatial halo, cast matmul
    # inputs to bf16 (f32 is kept only for the exact identity residual stream).
    xcp = jnp.pad(x, ((0, 0), (0, 0), (0, 0), (0, cin_p - c_in)))
    xp = jnp.pad(xcp, ((0, 0), (1, 1), (1, 1), (0, 0))).astype(jnp.bfloat16)
    w1m = _prep_w3x3(params["w1"], cin_p, cout_p)
    w2m = _prep_w3x3(params["w2"], cout_p, cout_p)

    def pad_c(v):
        return jnp.pad(v, (0, cout_p - c_out))

    # Inter-pass activations live in bf16; BN statistics come from the f32 accumulators.
    act_shape = jax.ShapeDtypeStruct((n, h_o, w_o, cout_p), jnp.bfloat16)
    act_spec = pl.BlockSpec((1, th, w_o, cout_p), lambda i, r: (i, r, 0, 0))
    plane_spec = pl.BlockSpec((1, h_o, w_o, cout_p), lambda i, r: (i, 0, 0, 0))
    st_shape = jax.ShapeDtypeStruct((n, n_rt, 2, cout_p), jnp.float32)
    st_spec = pl.BlockSpec((1, 1, 2, cout_p), lambda i, r: (i, r, 0, 0))
    row_spec = pl.BlockSpec((1, cout_p), lambda i, r: (0, 0))          # grid-invariant

    # ---- pass 1: conv1 (+ fused 1x1 downsample conv) + partial moments ----
    in_specs = [pl.BlockSpec((1, h + 2, w + 2, cin_p), lambda i, r: (i, 0, 0, 0)),
                pl.BlockSpec((3, 3 * cin_p, cout_p), lambda i, r: (0, 0, 0))]
    args = [xp, w1m]
    out_shape = [act_shape, st_shape]
    out_specs = [act_spec, st_spec]
    if has_ds:
        in_specs.append(pl.BlockSpec((cin_p, cout_p), lambda i, r: (0, 0)))
        args.append(_prep_w1x1(ds[0], cin_p, cout_p))
        out_shape = [act_shape, act_shape, st_shape, st_shape]
        out_specs = [act_spec, act_spec, st_spec, st_spec]

    res1 = pl.pallas_call(
        functools.partial(_stage1_kernel, stride=stride, has_ds=has_ds),
        grid=grid, in_specs=in_specs, out_specs=out_specs, out_shape=out_shape,
        compiler_params=cparams,
    )(*args)
    if has_ds:
        y1, idp, st1, std = res1
    else:
        y1, st1 = res1

    a1, s1 = _bn_affine(st1, pad_c(params["g1"]), pad_c(params["b1"]), count)

    # ---- pass 2: BN1 + ReLU + conv2 + partial moments ----
    y2, st2 = pl.pallas_call(
        _bn1_conv2_kernel,
        grid=grid,
        in_specs=[plane_spec, row_spec, row_spec,
                  pl.BlockSpec((3, 3 * cout_p, cout_p), lambda i, r: (0, 0, 0))],
        out_specs=[act_spec, st_spec],
        out_shape=[act_shape, st_shape],
        scratch_shapes=[pltpu.VMEM((th + 2, w_o + 2, cout_p), jnp.bfloat16)],
        compiler_params=cparams,
    )(y1, a1, s1, w2m)

    a2, s2 = _bn_affine(st2, pad_c(params["g2"]), pad_c(params["b2"]), count)
    if has_ds:
        aid, sid = _bn_affine(std, pad_c(ds[1]), pad_c(ds[2]), count)
        ident = idp
    else:
        # PyTorch BasicBlock: no downsample implies stride == 1 and c_in == c_out.
        assert stride == 1 and c_in == c_out
        aid = jnp.ones((1, cout_p), jnp.float32)
        sid = jnp.zeros((1, cout_p), jnp.float32)
        ident = xcp                                                # exact f32 identity

    # ---- pass 3: BN2 + residual add + ReLU (writes only the real c_out channels) ----
    out = pl.pallas_call(
        _bn2_add_relu_kernel,
        grid=grid,
        in_specs=[act_spec, act_spec, row_spec, row_spec, row_spec, row_spec],
        out_specs=pl.BlockSpec((1, th, w_o, c_out), lambda i, r: (i, r, 0, 0)),
        out_shape=jax.ShapeDtypeStruct((n, h_o, w_o, c_out), jnp.float32),
        compiler_params=cparams,
    )(y2, ident, a2, s2, aid, sid)

    return out


# ------------------------------ test scaffolding -------------------------------

def init_params(key, c_in, c_out, stride):
    """Deterministic synthetic parameters with the shapes BasicBlock.__init__ creates."""
    ks = jax.random.split(key, 8)
    w1 = jax.random.normal(ks[0], (c_out, c_in, 3, 3), jnp.float32) * (2.0 / (9 * c_in)) ** 0.5
    g1 = 1.0 + 0.1 * jax.random.normal(ks[1], (c_out,), jnp.float32)
    b1 = 0.1 * jax.random.normal(ks[2], (c_out,), jnp.float32)
    w2 = jax.random.normal(ks[3], (c_out, c_out, 3, 3), jnp.float32) * (2.0 / (9 * c_out)) ** 0.5
    g2 = 1.0 + 0.1 * jax.random.normal(ks[4], (c_out,), jnp.float32)
    b2 = 0.1 * jax.random.normal(ks[5], (c_out,), jnp.float32)
    params = dict(w1=w1, g1=g1, b1=b1, w2=w2, g2=g2, b2=b2)
    if stride != 1 or c_in != c_out:
        wd = jax.random.normal(ks[6], (c_out, c_in, 1, 1), jnp.float32) * (2.0 / c_in) ** 0.5
        gd = 1.0 + 0.1 * jax.random.normal(ks[7], (c_out,), jnp.float32)
        bd = jnp.zeros((c_out,), jnp.float32)
        params["downsample"] = (wd, gd, bd)
    else:
        params["downsample"] = None
    return params


def _reference(x, params, stride):
    """Pure-JAX reference of the same forward (training-mode BatchNorm)."""
    def bn(y, g, b):
        m = jnp.mean(y, axis=(0, 1, 2), keepdims=True)
        v = jnp.mean((y - m) ** 2, axis=(0, 1, 2), keepdims=True)
        return (y - m) * jax.lax.rsqrt(v + EPS) * g + b

    def conv(inp, w, s, p):
        return jax.lax.conv_general_dilated(
            inp, w, (s, s), [(p, p), (p, p)],
            dimension_numbers=("NHWC", "OIHW", "NHWC"))

    ident = x
    ds = params.get("downsample")
    if ds is not None:
        wd, gd, bd = ds
        ident = bn(conv(x, wd, stride, 0), gd, bd)
    y = jax.nn.relu(bn(conv(x, params["w1"], stride, 1), params["g1"], params["b1"]))
    y = bn(conv(y, params["w2"], 1, 1), params["g2"], params["b2"])
    return jax.nn.relu(y + ident)


if __name__ == "__main__":
    key = jax.random.PRNGKey(0)
    kx1, kp1, kx2, kp2 = jax.random.split(key, 4)

    # Config A: C_in != C_out -> the 1x1-conv + BN downsample branch is active.
    N, C_IN, C_OUT, H, W, STRIDE = 2, 4, 8, 16, 16, 1
    x_nchw = jax.random.normal(kx1, (N, C_IN, H, W), jnp.float32)   # PyTorch-style NCHW input
    x = jnp.transpose(x_nchw, (0, 2, 3, 1))                         # kernels use NHWC
    params = init_params(kp1, C_IN, C_OUT, STRIDE)
    out = jax.block_until_ready(basic_block_forward(x, params, stride=STRIDE))
    assert out.shape == (N, H // STRIDE, W // STRIDE, C_OUT)
    ref = jax.block_until_ready(_reference(x, params, STRIDE))
    err = float(jnp.max(jnp.abs(out - ref)))
    assert err < 5e-2, f"downsample path mismatch vs reference: max abs err = {err}"

    # Config B: C_in == C_out, stride 1 -> plain identity residual path.
    x2 = jnp.transpose(jax.random.normal(kx2, (N, C_OUT, H, W), jnp.float32), (0, 2, 3, 1))
    params2 = init_params(kp2, C_OUT, C_OUT, 1)
    out2 = jax.block_until_ready(basic_block_forward(x2, params2, stride=1))
    ref2 = jax.block_until_ready(_reference(x2, params2, 1))
    err2 = float(jnp.max(jnp.abs(out2 - ref2)))
    assert err2 < 5e-2, f"identity path mismatch vs reference: max abs err = {err2}"

    print("KERNEL_OK")
</pallas_src>

<mosaic_0001>
module attributes {stable_mosaic.version = 11 : i64} {
  func.func @_stage1_kernel(%arg0: i32, %arg1: i32, %arg2: memref<1x18x18x128xbf16, #tpu.memory_space<vmem>>, %arg3: memref<3x384x128xbf16, #tpu.memory_space<vmem>>, %arg4: memref<128x128xbf16, #tpu.memory_space<vmem>>, %arg5: memref<1x8x16x128xbf16, #tpu.memory_space<vmem>>, %arg6: memref<1x8x16x128xbf16, #tpu.memory_space<vmem>>, %arg7: memref<1x1x2x128xf32, #tpu.memory_space<vmem>>, %arg8: memref<1x1x2x128xf32, #tpu.memory_space<vmem>>) attributes {dimension_semantics = [#tpu.dimension_semantics<parallel>, #tpu.dimension_semantics<parallel>], iteration_bounds = array<i64: 2, 2>, scalar_prefetch = 0 : i64, scratch_operands = 0 : i64, tpu.core_type = #tpu.core_type<tc>, window_params = [{transform_indices = @transform_0, window_bounds = array<i64: 1, 18, 18, 128>}, {pipeline_mode = #tpu.pipeline_mode<synchronous>, transform_indices = @transform_1, window_bounds = array<i64: 3, 384, 128>}, {pipeline_mode = #tpu.pipeline_mode<synchronous>, transform_indices = @transform_2, window_bounds = array<i64: 128, 128>}, {transform_indices = @transform_3, window_bounds = array<i64: 1, 8, 16, 128>}, {transform_indices = @transform_4, window_bounds = array<i64: 1, 8, 16, 128>}, {transform_indices = @transform_5, window_bounds = array<i64: 1, 1, 2, 128>}, {transform_indices = @transform_6, window_bounds = array<i64: 1, 1, 2, 128>}]} {
    %c8_i32 = arith.constant 8 : i32
    %0 = arith.muli %arg1, %c8_i32 : i32
    %1 = tpu.assume_multiple %0, 8 : i32
    %cst = arith.constant 0.000000e+00 : f32
    %2 = vector.broadcast %cst : f32 to vector<128x128xf32>
    %c0_i32 = arith.constant 0 : i32
    %3 = arith.addi %1, %c0_i32 : i32
    %c0 = arith.constant 0 : index
    %4 = arith.index_cast %3 : i32 to index
    %c0_0 = arith.constant 0 : index
    %c0_1 = arith.constant 0 : index
    %5 = vector.load %arg2[%c0, %4, %c0_0, %c0_1] : memref<1x18x18x128xbf16, #tpu.memory_space<vmem>>, vector<1x8x16x128xbf16>
    %6 = vector.shape_cast %5 : vector<1x8x16x128xbf16> to vector<8x16x128xbf16>
    %c0_i32_2 = arith.constant 0 : i32
    %7 = arith.addi %1, %c0_i32_2 : i32
    %c0_3 = arith.constant 0 : index
    %8 = arith.index_cast %7 : i32 to index
    %c1 = arith.constant 1 : index
    %c0_4 = arith.constant 0 : index
    %9 = vector.load %arg2[%c0_3, %8, %c1, %c0_4] : memref<1x18x18x128xbf16, #tpu.memory_space<vmem>>, vector<1x8x16x128xbf16>
    %10 = vector.shape_cast %9 : vector<1x8x16x128xbf16> to vector<8x16x128xbf16>
    %c0_i32_5 = arith.constant 0 : i32
    %11 = arith.addi %1, %c0_i32_5 : i32
    %c0_6 = arith.constant 0 : index
    %12 = arith.index_cast %11 : i32 to index
    %c2 = arith.constant 2 : index
    %c0_7 = arith.constant 0 : index
    %13 = vector.load %arg2[%c0_6, %12, %c2, %c0_7] : memref<1x18x18x128xbf16, #tpu.memory_space<vmem>>, vector<1x8x16x128xbf16>
    %14 = vector.shape_cast %13 : vector<1x8x16x128xbf16> to vector<8x16x128xbf16>
    %15 = tpu.concatenate %6, %10, %14 in 2 : vector<8x16x128xbf16>, vector<8x16x128xbf16>, vector<8x16x128xbf16> -> vector<8x16x384xbf16>
    %16 = vector.shape_cast %15 : vector<8x16x384xbf16> to vector<128x384xbf16>
    %c0_8 = arith.constant 0 : index
    %c0_9 = arith.constant 0 : index
    %c0_10 = arith.constant 0 : index
    %17 = vector.load %arg3[%c0_8, %c0_9, %c0_10] : memref<3x384x128xbf16, #tpu.memory_space<vmem>>, vector<1x384x128xbf16>
    %18 = vector.shape_cast %17 : vector<1x384x128xbf16> to vector<384x128xbf16>
    %cst_11 = arith.constant dense<0.000000e+00> : vector<128x128xf32>
    %19 = tpu.matmul %16, %18, %cst_11 {dimension_numbers = #tpu.dot_dimension_numbers<[1], [0], [0], [1], [0, 0, 1, 1], [], []>} : vector<128x384xbf16>, vector<384x128xbf16>, vector<128x128xf32> -> vector<128x128xf32>
    %20 = arith.addf %2, %19 : vector<128x128xf32>
    %c1_i32 = arith.constant 1 : i32
    %21 = arith.addi %1, %c1_i32 : i32
    %c0_12 = arith.constant 0 : index
    %22 = arith.index_cast %21 : i32 to index
    %c0_13 = arith.constant 0 : index
    %c0_14 = arith.constant 0 : index
    %23 = vector.load %arg2[%c0_12, %22, %c0_13, %c0_14] : memref<1x18x18x128xbf16, #tpu.memory_space<vmem>>, vector<1x8x16x128xbf16>
    %24 = vector.shape_cast %23 : vector<1x8x16x128xbf16> to vector<8x16x128xbf16>
    %c1_i32_15 = arith.constant 1 : i32
    %25 = arith.addi %1, %c1_i32_15 : i32
    %c0_16 = arith.constant 0 : index
    %26 = arith.index_cast %25 : i32 to index
    %c1_17 = arith.constant 1 : index
    %c0_18 = arith.constant 0 : index
    %27 = vector.load %arg2[%c0_16, %26, %c1_17, %c0_18] : memref<1x18x18x128xbf16, #tpu.memory_space<vmem>>, vector<1x8x16x128xbf16>
    %28 = vector.shape_cast %27 : vector<1x8x16x128xbf16> to vector<8x16x128xbf16>
    %c1_i32_19 = arith.constant 1 : i32
    %29 = arith.addi %1, %c1_i32_19 : i32
    %c0_20 = arith.constant 0 : index
    %30 = arith.index_cast %29 : i32 to index
    %c2_21 = arith.constant 2 : index
    %c0_22 = arith.constant 0 : index
    %31 = vector.load %arg2[%c0_20, %30, %c2_21, %c0_22] : memref<1x18x18x128xbf16, #tpu.memory_space<vmem>>, vector<1x8x16x128xbf16>
    %32 = vector.shape_cast %31 : vector<1x8x16x128xbf16> to vector<8x16x128xbf16>
    %33 = tpu.concatenate %24, %28, %32 in 2 : vector<8x16x128xbf16>, vector<8x16x128xbf16>, vector<8x16x128xbf16> -> vector<8x16x384xbf16>
    %34 = vector.shape_cast %33 : vector<8x16x384xbf16> to vector<128x384xbf16>
    %c1_23 = arith.constant 1 : index
    %c0_24 = arith.constant 0 : index
    %c0_25 = arith.constant 0 : index
    %35 = vector.load %arg3[%c1_23, %c0_24, %c0_25] : memref<3x384x128xbf16, #tpu.memory_space<vmem>>, vector<1x384x128xbf16>
    %36 = vector.shape_cast %35 : vector<1x384x128xbf16> to vector<384x128xbf16>
    %cst_26 = arith.constant dense<0.000000e+00> : vector<128x128xf32>
    %37 = tpu.matmul %34, %36, %cst_26 {dimension_numbers = #tpu.dot_dimension_numbers<[1], [0], [0], [1], [0, 0, 1, 1], [], []>} : vector<128x384xbf16>, vector<384x128xbf16>, vector<128x128xf32> -> vector<128x128xf32>
    %38 = arith.addf %20, %37 : vector<128x128xf32>
    %c2_i32 = arith.constant 2 : i32
    %39 = arith.addi %1, %c2_i32 : i32
    %c0_27 = arith.constant 0 : index
    %40 = arith.index_cast %39 : i32 to index
    %c0_28 = arith.constant 0 : index
    %c0_29 = arith.constant 0 : index
    %41 = vector.load %arg2[%c0_27, %40, %c0_28, %c0_29] : memref<1x18x18x128xbf16, #tpu.memory_space<vmem>>, vector<1x8x16x128xbf16>
    %42 = vector.shape_cast %41 : vector<1x8x16x128xbf16> to vector<8x16x128xbf16>
    %c2_i32_30 = arith.constant 2 : i32
    %43 = arith.addi %1, %c2_i32_30 : i32
    %c0_31 = arith.constant 0 : index
    %44 = arith.index_cast %43 : i32 to index
    %c1_32 = arith.constant 1 : index
    %c0_33 = arith.constant 0 : index
    %45 = vector.load %arg2[%c0_31, %44, %c1_32, %c0_33] : memref<1x18x18x128xbf16, #tpu.memory_space<vmem>>, vector<1x8x16x128xbf16>
    %46 = vector.shape_cast %45 : vector<1x8x16x128xbf16> to vector<8x16x128xbf16>
    %c2_i32_34 = arith.constant 2 : i32
    %47 = arith.addi %1, %c2_i32_34 : i32
    %c0_35 = arith.constant 0 : index
    %48 = arith.index_cast %47 : i32 to index
    %c2_36 = arith.constant 2 : index
    %c0_37 = arith.constant 0 : index
    %49 = vector.load %arg2[%c0_35, %48, %c2_36, %c0_37] : memref<1x18x18x128xbf16, #tpu.memory_space<vmem>>, vector<1x8x16x128xbf16>
    %50 = vector.shape_cast %49 : vector<1x8x16x128xbf16> to vector<8x16x128xbf16>
    %51 = tpu.concatenate %42, %46, %50 in 2 : vector<8x16x128xbf16>, vector<8x16x128xbf16>, vector<8x16x128xbf16> -> vector<8x16x384xbf16>
    %52 = vector.shape_cast %51 : vector<8x16x384xbf16> to vector<128x384xbf16>
    %c2_38 = arith.constant 2 : index
    %c0_39 = arith.constant 0 : index
    %c0_40 = arith.constant 0 : index
    %53 = vector.load %arg3[%c2_38, %c0_39, %c0_40] : memref<3x384x128xbf16, #tpu.memory_space<vmem>>, vector<1x384x128xbf16>
    %54 = vector.shape_cast %53 : vector<1x384x128xbf16> to vector<384x128xbf16>
    %cst_41 = arith.constant dense<0.000000e+00> : vector<128x128xf32>
    %55 = tpu.matmul %52, %54, %cst_41 {dimension_numbers = #tpu.dot_dimension_numbers<[1], [0], [0], [1], [0, 0, 1, 1], [], []>} : vector<128x384xbf16>, vector<384x128xbf16>, vector<128x128xf32> -> vector<128x128xf32>
    %56 = arith.addf %38, %55 : vector<128x128xf32>
    %57 = vector.shape_cast %56 : vector<128x128xf32> to vector<8x16x128xf32>
    %58 = arith.truncf %57 : vector<8x16x128xf32> to vector<8x16x128xbf16>
    %c0_42 = arith.constant 0 : index
    %c0_43 = arith.constant 0 : index
    %c0_44 = arith.constant 0 : index
    %c0_45 = arith.constant 0 : index
    %59 = vector.load %arg5[%c0_42, %c0_43, %c0_44, %c0_45] : memref<1x8x16x128xbf16, #tpu.memory_space<vmem>>, vector<1x8x16x128xbf16>
    %60 = vector.shape_cast %59 : vector<1x8x16x128xbf16> to vector<8x16x128xbf16>
    %61 = vector.shape_cast %58 : vector<8x16x128xbf16> to vector<1x8x16x128xbf16>
    tpu.vector_store %arg5[%c0_42, %c0_43, %c0_44, %c0_45], %61 {strides = array<i32>} : memref<1x8x16x128xbf16, #tpu.memory_space<vmem>>, vector<1x8x16x128xbf16>,
    %cst_46 = arith.constant dense<0.000000e+00> : vector<128xf32>
    %62 = vector.multi_reduction <add>, %56, %cst_46 [0] : vector<128x128xf32> to vector<128xf32>
    %63 = vector.shape_cast %62 : vector<128xf32> to vector<1x128xf32>
    %64 = arith.mulf %56, %56 : vector<128x128xf32>
    %cst_47 = arith.constant dense<0.000000e+00> : vector<128xf32>
    %65 = vector.multi_reduction <add>, %64, %cst_47 [0] : vector<128x128xf32> to vector<128xf32>
    %66 = vector.shape_cast %65 : vector<128xf32> to vector<1x128xf32>
    %67 = tpu.concatenate %63, %66 in 0 : vector<1x128xf32>, vector<1x128xf32> -> vector<2x128xf32>
    %68 = vector.shape_cast %67 : vector<2x128xf32> to vector<1x1x2x128xf32>
    %c0_48 = arith.constant 0 : index
    %c0_49 = arith.constant 0 : index
    %c0_50 = arith.constant 0 : index
    %c0_51 = arith.constant 0 : index
    %69 = vector.load %arg7[%c0_48, %c0_49, %c0_50, %c0_51] : memref<1x1x2x128xf32, #tpu.memory_space<vmem>>, vector<1x1x2x128xf32>
    tpu.vector_store %arg7[%c0_48, %c0_49, %c0_50, %c0_51], %68 {strides = array<i32>} : memref<1x1x2x128xf32, #tpu.memory_space<vmem>>, vector<1x1x2x128xf32>,
    %c1_i32_52 = arith.constant 1 : i32
    %70 = arith.addi %1, %c1_i32_52 : i32
    %c0_53 = arith.constant 0 : index
    %71 = arith.index_cast %70 : i32 to index
    %c1_54 = arith.constant 1 : index
    %c0_55 = arith.constant 0 : index
    %72 = vector.load %arg2[%c0_53, %71, %c1_54, %c0_55] : memref<1x18x18x128xbf16, #tpu.memory_space<vmem>>, vector<1x8x16x128xbf16>
    %73 = vector.shape_cast %72 : vector<1x8x16x128xbf16> to vector<8x16x128xbf16>
    %74 = vector.shape_cast %73 : vector<8x16x128xbf16> to vector<128x128xbf16>
    %c0_56 = arith.constant 0 : index
    %c0_57 = arith.constant 0 : index
    %75 = vector.load %arg4[%c0_56, %c0_57] : memref<128x128xbf16, #tpu.memory_space<vmem>>, vector<128x128xbf16>
    %cst_58 = arith.constant dense<0.000000e+00> : vector<128x128xf32>
    %76 = tpu.matmul %74, %75, %cst_58 {dimension_numbers = #tpu.dot_dimension_numbers<[1], [0], [0], [1], [0, 0, 1, 1], [], []>} : vector<128x128xbf16>, vector<128x128xbf16>, vector<128x128xf32> -> vector<128x128xf32>
    %77 = vector.shape_cast %76 : vector<128x128xf32> to vector<8x16x128xf32>
    %78 = arith.truncf %77 : vector<8x16x128xf32> to vector<8x16x128xbf16>
    %c0_59 = arith.constant 0 : index
    %c0_60 = arith.constant 0 : index
    %c0_61 = arith.constant 0 : index
    %c0_62 = arith.constant 0 : index
    %79 = vector.load %arg6[%c0_59, %c0_60, %c0_61, %c0_62] : memref<1x8x16x128xbf16, #tpu.memory_space<vmem>>, vector<1x8x16x128xbf16>
    %80 = vector.shape_cast %79 : vector<1x8x16x128xbf16> to vector<8x16x128xbf16>
    %81 = vector.shape_cast %78 : vector<8x16x128xbf16> to vector<1x8x16x128xbf16>
    tpu.vector_store %arg6[%c0_59, %c0_60, %c0_61, %c0_62], %81 {strides = array<i32>} : memref<1x8x16x128xbf16, #tpu.memory_space<vmem>>, vector<1x8x16x128xbf16>,
    %cst_63 = arith.constant dense<0.000000e+00> : vector<128xf32>
    %82 = vector.multi_reduction <add>, %76, %cst_63 [0] : vector<128x128xf32> to vector<128xf32>
    %83 = vector.shape_cast %82 : vector<128xf32> to vector<1x128xf32>
    %84 = arith.mulf %76, %76 : vector<128x128xf32>
    %cst_64 = arith.constant dense<0.000000e+00> : vector<128xf32>
    %85 = vector.multi_reduction <add>, %84, %cst_64 [0] : vector<128x128xf32> to vector<128xf32>
    %86 = vector.shape_cast %85 : vector<128xf32> to vector<1x128xf32>
    %87 = tpu.concatenate %83, %86 in 0 : vector<1x128xf32>, vector<1x128xf32> -> vector<2x128xf32>
    %88 = vector.shape_cast %87 : vector<2x128xf32> to vector<1x1x2x128xf32>
    %c0_65 = arith.constant 0 : index
    %c0_66 = arith.constant 0 : index
    %c0_67 = arith.constant 0 : index
    %c0_68 = arith.constant 0 : index
    %89 = vector.load %arg8[%c0_65, %c0_66, %c0_67, %c0_68] : memref<1x1x2x128xf32, #tpu.memory_space<vmem>>, vector<1x1x2x128xf32>
    tpu.vector_store %arg8[%c0_65, %c0_66, %c0_67, %c0_68], %88 {strides = array<i32>} : memref<1x1x2x128xf32, #tpu.memory_space<vmem>>, vector<1x1x2x128xf32>,
    return
  }
  func.func @transform_0(%arg0: i32, %arg1: i32) -> (i32, i32, i32, i32) {
    %c0_i32 = arith.constant 0 : i32
    %c0_i32_0 = arith.constant 0 : i32
    %c0_i32_1 = arith.constant 0 : i32
    %c0_i32_2 = arith.constant 0 : i32
    return %arg0, %c0_i32, %c0_i32_0, %c0_i32_1 : i32, i32, i32, i32
  }
  func.func @transform_1(%arg0: i32, %arg1: i32) -> (i32, i32, i32) {
    %c0_i32 = arith.constant 0 : i32
    %c0_i32_0 = arith.constant 0 : i32
    %c0_i32_1 = arith.constant 0 : i32
    %c0_i32_2 = arith.constant 0 : i32
    return %c0_i32, %c0_i32_0, %c0_i32_1 : i32, i32, i32
  }
  func.func @transform_2(%arg0: i32, %arg1: i32) -> (i32, i32) {
    %c0_i32 = arith.constant 0 : i32
    %c0_i32_0 = arith.constant 0 : i32
    %c0_i32_1 = arith.constant 0 : i32
    return %c0_i32, %c0_i32_0 : i32, i32
  }
  func.func @transform_3(%arg0: i32, %arg1: i32) -> (i32, i32, i32, i32) {
    %c0_i32 = arith.constant 0 : i32
    %c0_i32_0 = arith.constant 0 : i32
    %c0_i32_1 = arith.constant 0 : i32
    return %arg0, %arg1, %c0_i32, %c0_i32_0 : i32, i32, i32, i32
  }
  func.func @transform_4(%arg0: i32, %arg1: i32) -> (i32, i32, i32, i32) {
    %c0_i32 = arith.constant 0 : i32
    %c0_i32_0 = arith.constant 0 : i32
    %c0_i32_1 = arith.constant 0 : i32
    return %arg0, %arg1, %c0_i32, %c0_i32_0 : i32, i32, i32, i32
  }
  func.func @transform_5(%arg0: i32, %arg1: i32) -> (i32, i32, i32, i32) {
    %c0_i32 = arith.constant 0 : i32
    %c0_i32_0 = arith.constant 0 : i32
    %c0_i32_1 = arith.constant 0 : i32
    return %arg0, %arg1, %c0_i32, %c0_i32_0 : i32, i32, i32, i32
  }
  func.func @transform_6(%arg0: i32, %arg1: i32) -> (i32, i32, i32, i32) {
    %c0_i32 = arith.constant 0 : i32
    %c0_i32_0 = arith.constant 0 : i32
    %c0_i32_1 = arith.constant 0 : i32
    return %arg0, %arg1, %c0_i32, %c0_i32_0 : i32, i32, i32, i32
  }
}

</mosaic_0001>

<bundles_post_ra>
// kernel: tpu_custom_call.1
= control target key start
LH: loop header
LB: loop body
LE: loop exit
PB: predicated region body
PF: predicated region fallthrough
CT: control target
= control target key end

     0   :  { %s5121_s0 = inlined_call_operand.vmem [shape: bf16[2,18,18,128], index: 0, kind: input, shape index: {}]   ;;  %s5122_s1 = inlined_call_operand.vmem [shape: bf16[3,384,128], index: 1, kind: input, shape index: {}]   ;;  %s5123_s2 = inlined_call_operand.vmem [shape: bf16[128,128], index: 2, kind: input, shape index: {}]   ;;  %s5124_s3 = inlined_call_operand.hbm [shape: bf16[2,16,16,128], index: 3, kind: output, shape index: {0}]   ;;  %s5125_s4 = inlined_call_operand.hbm [shape: bf16[2,16,16,128], index: 4, kind: output, shape index: {1}]   ;;  %s5126_s5 = inlined_call_operand.hbm [shape: f32[2,2,2,128], index: 5, kind: output, shape index: {2}]   ;;  %s5127_s6 = inlined_call_operand.hbm [shape: f32[2,2,2,128], index: 6, kind: output, shape index: {3}]  }
   0x1   :  { %5136 = sst [smem:[#allocation14_spill]] %s5121_s0 }
   0x2   :  { %5137 = sst [smem:[#allocation15_spill]] %s5122_s1 }
   0x3   :  { %5138 = sst [smem:[#allocation16_spill]] %s5123_s2 }
   0x4   :  { %12 = vsyncpa [#allocation3], 0 }
   0x5   :  { %14 = vsyncpa [#allocation3 + $0x1], 0 }
   0x6   :  { %15 = vsyncpa [#allocation5], 0 }
   0x7   :  { %17 = vsyncpa [#allocation5 + $0x1], 0 }
   0x8   :  { %18 = vsyncpa [#allocation8], 0 }
   0x9   :  { %20 = vsyncpa [#allocation8 + $0x1], 0  ;;  %s4142_s21 = smov 0   ;;  %s4144_s22 = smov 0  }
   0xa   :  { %s4146_s23 = smov 0   ;;  %s4148_s24 = smov 0  }
   0xb   :  { %s4150_s25 = smov 0   ;;  %s4152_s26 = smov 0  }
   0xc   :  { %s4154_s27 = smov 0   ;;  %s4156_s28 = smov 0  }
   0xd LB: > { %s5129_s29 = sadd.s32 4294967295, %s4103_s28   ;;  %s5128_s30 = sadd.s32 4294967294, %s4103_s28   ;;  %s4103_s28 = sphi %s4156_s28, %s26_s28   ;;  %s4099_s27 = sphi %s4154_s27, %s5162_s27   ;;  %s4095_s26 = sphi %s4152_s26, %s5161_s26   ;;  %s4091_s25 = sphi %s4150_s25, %s5160_s25   ;;  %s4087_s24 = sphi %s4148_s24, %s5159_s24   ;;  %s4083_s23 = sphi %s4146_s23, %s5158_s23   ;;  %s4079_s22 = sphi %s4144_s22, %s5157_s22   ;;  %s4075_s21 = sphi %s4142_s21, %s5156_s21  }
   0xe   : > { %s35_s7 = sadd.s32 1, %s4095_s26  ;;  %s38_s8 = sadd.s32 1, %s4099_s27 }
   0xf   : > { %p36_p0 = scmp.ge.s32.totalorder %s35_s7, 2  ;;  %p125_p1 = scmp.ne.s32.totalorder %s4083_s23, %s4079_s22 }
  0x10   : > { %p126_p2 = scmp.eq.s32.totalorder %s5129_s29, 3  ;;  %p131_p5 = scmp.ne.s32.totalorder %s4079_s22, %s4075_s21 }
  0x11   : > { %s5164_s7 = smov (%p36_p0, %s35_s7), 0  ;;  %s5166_s8 = smov (!%p36_p0, %s38_s8), %s4099_s27 }
  0x12   : > { %5139 = sst [smem:[#allocation12_spill]] %s5164_s7  ;;  %s111_s9 = ssub.s32 %s4095_s26, %s5164_s7 }
  0x13   : > { %p4195_p3 = por %p126_p2, %p125_p1  ;;  %p40_p4 = scmp.ge.s32.totalorder %s5166_s8, 2 }
  0x14   : > { %p132_p6 = scmp.eq.s32.totalorder %s5128_s30, 3  ;;  %p2969_p7 = scmp.ge.s32.totalorder %s4103_s28, 1 }
  0x15   : > { %s5168_s8 = smov (%p40_p4, %s5166_s8), 0  ;;  %p248_p9 = scmp.lt.s32.totalorder %s4103_s28, 5 }
  0x16   : > { %5141 = sst [smem:[#allocation13_spill]] %s5168_s8  ;;  %p4206_p8 = por %p132_p6, %p131_p5 }
  0x17   : > { %s110_s12 = ssub.s32 %s4099_s27, %s5168_s8  ;;  %s115_s13 = sadd.s32 1, %s4083_s23 }
  0x18   : > { %s112_s14 = sor.u32 %s111_s9, %s110_s12  ;;  %p249_p10 = pnand %p2969_p7, %p248_p9 }
  0x19   : > { %p113_p11 = scmp.eq.s32.totalorder %s112_s14, 0  ;;  %s5143_s1 = sld [smem:[#allocation15_spill]] (!%p249_p10) }
  0x1a   : > { %252 = sbr.rel (%p249_p10) target bundleno = 555 (0x22b), region = 32  ;;  %p293_p12 = scmp.lt.s32.totalorder (!%p249_p10), %s4091_s25, 1 }
  0x1b   : > { %s4215_s15 = scalar_select %p113_p11, %s4083_s23, %s115_s13  }
  0x1c   : > { %s3504_s16 = smul.u32 (!%p249_p10), 96, %s4087_s24  ;;  %s5144_s0 = sld [smem:[#allocation14_spill]] (!%p249_p10) }
  0x1d   : > { %s5145_s2 = sld [smem:[#allocation16_spill]] (!%p249_p10)  ;;  %s3585_s19 = sshll.u32 (!%p249_p10), %s4087_s24, 4 }
  0x1e   : > { %s5148_s14 = sadd.s32 (!%p249_p10), 4294967295, %s4103_s28   ;;  %s3498_s30 = sshll.u32 (!%p249_p10), %s4091_s25, 1 }
  0x1f   : > { %v3536_v0 = vld [vmem:[%s5143_s1 + $0xf8] sm:$0xff]  ;;  %v3535_v2 = vld [vmem:[%s5143_s1 + $0xf0] sm:$0xff]  ;;  %s294_s12 = scalar_select %p293_p12, %s4091_s25, 1  ;;  %v3534_v4 = vld [vmem:[%s5143_s1 + $0xe8] sm:$0xff]  ;;  %vm408_vm0 = vsmask.f32 7424 }
  0x20   : > { %v3544_v1 = vld [vmem:[%s5143_s1 + $0x138] sm:$0xff]  ;;  %1079 = vmatpush.bf16.msra.mxu0 %v3536_v0  ;;  %3776 = vmatpush.bf16.msra.mxu2 %v3536_v0  ;;  %v3543_v3 = vld [vmem:[%s5143_s1 + $0x130] sm:$0xff]  ;;  %v3542_v5 = vld [vmem:[%s5143_s1 + $0x128] sm:$0xff]  ;;  %vm537_vm1 = vcmask 1046528   ;;  %vm2258_vm2 = vsmask.f32 3328  ;;  %s4999_s8 = sadd.s32 %s4087_s24, %s3498_s30 }
  0x21   : > { %1128 = vmatpush.bf16.msra.mxu1 %v3544_v1  ;;  %3784 = vmatpush.bf16.msra.mxu3 %v3544_v1  ;;  %s3792_s17 = smul.u32 216, %s294_s12  ;;  %v3533_v10 = vld [vmem:[%s5143_s1 + $0xe0] sm:$0xff]  ;;  %v3532_v14 = vld [vmem:[%s5143_s1 + $0xd8] sm:$0xff]  ;;  %v3531_v18 = vld [vmem:[%s5143_s1 + $0xd0] sm:$0xff]  ;;  %vm2259_vm3 = vsmask.f32 7440 }
  0x22   : > { %v3541_v11 = vld [vmem:[%s5143_s1 + $0x120] sm:$0xff]  ;;  %v3540_v15 = vld [vmem:[%s5143_s1 + $0x118] sm:$0xff]  ;;  %v3539_v19 = vld [vmem:[%s5143_s1 + $0x110] sm:$0xff] }
  0x23   : > { %s297_s20 = scalar_lea.vmem %s5144_s0, %s3792_s17  ;;  %v3530_v24 = vld [vmem:[%s5143_s1 + $0xc8] sm:$0xff]  ;;  %v3529_v32 = vld [vmem:[%s5143_s1 + $0xc0] sm:$0xff]  ;;  %v3552_v39 = vld [vmem:[%s5143_s1 + $0x178] sm:$0xff] }
  0x24   : > { %1080 = vmatpush.bf16.msra.mxu0 %v3535_v2  ;;  %3777 = vmatpush.bf16.msra.mxu2 %v3535_v2  ;;  %s4241_s13 = scalar_lea.vmem %s297_s20, %s3504_s16  ;;  %v3538_v27 = vld [vmem:[%s5143_s1 + $0x108] sm:$0xff]  ;;  %v3537_v33 = vld [vmem:[%s5143_s1 + $0x100] sm:$0xff]  ;;  %v3512_v40 = vld [vmem:[%s5143_s1 + $0x38] sm:$0xff]  ;;  %s3492_s20 = sshll.u32 %s4091_s25, 5 }
  0x25   : > { %1129 = vmatpush.bf16.msra.mxu1 %v3543_v3  ;;  %3785 = vmatpush.bf16.msra.mxu3 %v3543_v3  ;;  %v4244_v6 = vld [vmem:[%s4241_s13 + $0xc] sm:$0xff]   ;;  %v4250_v8 = vld [vmem:[%s4241_s13 + $0x3c] sm:$0xff]   ;;  %v2996_v12 = vld [vmem:[%s4241_s13 + $0x14] sm:$0x1]  ;;  %s4979_s9 = sadd.s32 %s3585_s19, %s3492_s20 }
  0x26   : > { %v4247_v7 = vld [vmem:[%s4241_s13 + $0xc] sm:$0xf0]  ;;  %v4253_v9 = vld [vmem:[%s4241_s13 + $0x3c] sm:$0xf0]  ;;  %v3000_v13 = vld [vmem:[%s4241_s13 + $0x44] sm:$0x1]  ;;  %v710_v16 = vunpack.c.l.b16 %v2996_v12 }
  0x27   : > { %v714_v17 = vunpack.c.l.b16 %v3000_v13  ;;  %v729_v21 = vshll.u32 %v4244_v6, 16  ;;  %v777_v23 = vshll.u32 %v4250_v8, 16  ;;  %v727_v25 = vshrl.u32 %v4244_v6, 16  ;;  %v2997_v38 = vld [vmem:[%s4241_s13 + $0x20] sm:$0x1]  ;;  %v3520_v45 = vld [vmem:[%s5143_s1 + $0x78] sm:$0xff]  ;;  %vm4704_vm4 = vmor %vm2258_vm2, %vm2259_vm3 }
  0x28   : > { %1081 = vmatpush.bf16.msra.mxu0 %v3534_v4  ;;  %3778 = vmatpush.bf16.msra.mxu2 %v3534_v4  ;;  %v4275_v20 = vpack.c.b16 %v710_v16, %v710_v16  ;;  %v775_v26 = vshrl.u32 %v4250_v8, 16  ;;  %v3001_v41 = vld [vmem:[%s4241_s13 + $0x50] sm:$0x1]  ;;  %v711_v42 = vunpack.c.l.b16 %v2997_v38  ;;  %v3528_v46 = vld [vmem:[%s5143_s1 + $0xb8] sm:$0xff]  ;;  %v4323_v51 = vld [vmem:[%s4241_s13 + $0x48] sm:$0xff]   ;;  %s5131_s29 = sshll.u32 %s4979_s9, 2 }
  0x29   : > { %1130 = vmatpush.bf16.msra.mxu1 %v3542_v5  ;;  %3786 = vmatpush.bf16.msra.mxu3 %v3542_v5  ;;  %v4278_v22 = vpack.c.b16 %v714_v17, %v714_v17  ;;  %v731_v28 = vrot.slane %v729_v21, 1  ;;  %v779_v30 = vrot.slane %v777_v23, 1  ;;  %v4314_v47 = vld [vmem:[%s4241_s13 + $0x18] sm:$0xff]   ;;  %v715_v48 = vunpack.c.l.b16 %v3001_v41  ;;  %v3551_v49 = vld [vmem:[%s5143_s1 + $0x170] sm:$0xff]  ;;  %v3550_v58 = vld [vmem:[%s5143_s1 + $0x168] sm:$0xff]  ;;  %s2740_s12 = scalar_lea.hbm %s5125_s4, %s5131_s29 }
  0x2a   : > { %v734_v29 = vshll.u32 %v4275_v20, 16  ;;  %v3511_v50 = vld [vmem:[%s5143_s1 + $0x30] sm:$0xff]  ;;  %v741_v52 = vshll.u32 %v4314_v47, 16  ;;  %v4328_v53 = vpack.c.b16 %v711_v42, %v711_v42  ;;  %v789_v54 = vshll.u32 %v4323_v51, 16  ;;  %v3510_v59 = vld [vmem:[%s5143_s1 + $0x28] sm:$0xff]  ;;  %v3517_v17 = vld [vmem:[%s5143_s1 + $0x60] sm:$0xff] }
  0x2b   : > { %v782_v31 = vshll.u32 %v4278_v22, 16  ;;  %v732_v34 = vor.u32 %v731_v28, %v727_v25  ;;  %v780_v36 = vor.u32 %v779_v30, %v775_v26  ;;  %v4331_v55 = vpack.c.b16 %v715_v48, %v715_v48  ;;  %v3519_v56 = vld [vmem:[%s5143_s1 + $0x70] sm:$0xff]  ;;  %v3518_v2 = vld [vmem:[%s5143_s1 + $0x68] sm:$0xff]  ;;  %v3548_v21 = vld [vmem:[%s5143_s1 + $0x158] sm:$0xff]  ;;  %s2743_s20 = sshll.u32 %s2740_s12, 4  ;;  %s2744_s20 = int_to_ptr.hbm [resolvable:$true] %s2743_s20 }
  0x2c   : > { %1082 = vmatpush.bf16.msra.mxu0 %v3533_v10  ;;  %3779 = vmatpush.bf16.msra.mxu2 %v3533_v10  ;;  %v736_v35 = vrot.slane %v734_v29, 1  ;;  %v3527_v57 = vld [vmem:[%s5143_s1 + $0xb0] sm:$0xff]  ;;  %v739_v60 = vshrl.u32 %v4314_v47, 16  ;;  %v743_v61 = vrot.slane %v741_v52, 1  ;;  %v746_v62 = vshll.u32 %v4328_v53, 16  ;;  %v3526_v3 = vld [vmem:[%s5143_s1 + $0xa8] sm:$0xff] }
  0x2d   : > { %1131 = vmatpush.bf16.msra.mxu1 %v3541_v11  ;;  %3787 = vmatpush.bf16.msra.mxu3 %v3541_v11  ;;  %v784_v37 = vrot.slane %v782_v31, 1  ;;  %v787_v63 = vshrl.u32 %v4323_v51, 16  ;;  %v791_v0 = vrot.slane %v789_v54, 1  ;;  %v794_v1 = vshll.u32 %v4331_v55, 16  ;;  %v4356_v4 = vld [vmem:[%s4241_s13 + $0x24] sm:$0xff]   ;;  %v4368_v10 = vld [vmem:[%s4241_s13 + $0x54] sm:$0xff]  }
  0x2e   : > { %v737_v43 = vsel %vm408_vm0, %v732_v34, %v736_v35  ;;  %v4359_v5 = vld [vmem:[%s4241_s13 + $0x24] sm:$0xf0]  ;;  %v4371_v11 = vld [vmem:[%s4241_s13 + $0x54] sm:$0xf0]  ;;  %v4373_v12 = vor.u32 %v743_v61, %v739_v60  ;;  %v748_v13 = vrot.slane %v746_v62, 1  ;;  %v3547_v30 = vld [vmem:[%s5143_s1 + $0x150] sm:$0xff] }
  0x2f   : > { %v785_v44 = vsel %vm408_vm0, %v780_v36, %v784_v37  ;;  %v2998_v16 = vld [vmem:[%s4241_s13 + $0x2c] sm:$0x1]  ;;  %v3508_v23 = vld [vmem:[%s5143_s1 + $0x18] sm:$0xff]  ;;  %v3507_v31 = vld [vmem:[%s5143_s1 + $0x10] sm:$0xff]  ;;  %v801_v35 = vshll.u32 %v4368_v10, 16  ;;  %v751_v41 = vshrl.u32 %v4356_v4, 16 }
  0x30   : > { %1083 = vmatpush.bf16.msra.mxu0 %v3532_v14  ;;  %3780 = vmatpush.bf16.msra.mxu2 %v3532_v14  ;;  %v4375_v14 = vor.u32 %v791_v0, %v787_v63  ;;  %v712_v26 = vunpack.c.l.b16 %v2998_v16  ;;  %v3516_v28 = vld [vmem:[%s5143_s1 + $0x58] sm:$0xff]  ;;  %v3515_v36 = vld [vmem:[%s5143_s1 + $0x50] sm:$0xff]  ;;  %v3546_v38 = vld [vmem:[%s5143_s1 + $0x148] sm:$0xff] }
  0x31   : > { %1132 = vmatpush.bf16.msra.mxu1 %v3540_v15  ;;  %3788 = vmatpush.bf16.msra.mxu3 %v3540_v15  ;;  %v796_v15 = vrot.slane %v794_v1, 1  ;;  %v3524_v29 = vld [vmem:[%s5143_s1 + $0x98] sm:$0xff]  ;;  %v3523_v37 = vld [vmem:[%s5143_s1 + $0x90] sm:$0xff]  ;;  %v3514_v48 = vld [vmem:[%s5143_s1 + $0x48] sm:$0xff] }
  0x32   : > { %v3505_v52 = vld [vmem:[%s5143_s1] sm:$0xff]  ;;  %v2999_v63 = vld [vmem:[%s4241_s13 + $0x38] sm:$0x1] }
  0x33   : > { %v797_v25 = vsel %vm408_vm0, %v4375_v14, %v796_v15  ;;  %v3513_v62 = vld [vmem:[%s5143_s1 + $0x40] sm:$0xff]  ;;  %v3560_v16 = vld [vmem:[%s5143_s1 + $0x1b8] sm:$0xff] }
  0x34   : > { %1084 = vmatpush.bf16.msra.mxu0 %v3531_v18  ;;  %3781 = vmatpush.bf16.msra.mxu2 %v3531_v18  ;;  %v3525_v18 = vld [vmem:[%s5143_s1 + $0xa0] sm:$0xff] }
  0x35   : > { %1133 = vmatpush.bf16.msra.mxu1 %v3539_v19  ;;  %3789 = vmatpush.bf16.msra.mxu3 %v3539_v19  ;;  %v3002_v19 = vld [vmem:[%s4241_s13 + $0x5c] sm:$0x1] }
  0x38   : > { %1085 = vmatpush.bf16.msra.mxu0 %v3530_v24  ;;  %3782 = vmatpush.bf16.msra.mxu2 %v3530_v24  ;;  %v749_v24 = vsel %vm408_vm0, %v4373_v12, %v748_v13  ;;  %v3733_v13 = vld [vmem:[%s4241_s13 + $0x60] sm:$0xff]  }
  0x39   : > { %1134 = vmatpush.bf16.msra.mxu1 %v3538_v27  ;;  %3790 = vmatpush.bf16.msra.mxu3 %v3538_v27  ;;  %v716_v27 = vunpack.c.l.b16 %v3002_v19  ;;  %v813_v19 = vshll.u32 %v3733_v13, 16 }
  0x3b   : > { %v4412_v34 = vpack.c.b16 %v716_v27, %v716_v27 }
  0x3c   : > { %1086 = vmatpush.bf16.msra.mxu0 %v3529_v32  ;;  %3783 = vmatpush.bf16.msra.mxu2 %v3529_v32  ;;  %v753_v32 = vshll.u32 %v4356_v4, 16 }
  0x3d   : > { %1135 = vmatpush.bf16.msra.mxu1 %v3537_v33  ;;  %3791 = vmatpush.bf16.msra.mxu3 %v3537_v33  ;;  %v4410_v33 = vpack.c.b16 %v712_v26, %v712_v26  ;;  %v815_v26 = vrot.slane %v813_v19, 1  ;;  %v3734_v19 = vld [vmem:[%s4241_s13 + $0x18] sm:$0xf0] }
  0x3e   : > { %v755_v42 = vrot.slane %v753_v32, 1 }
  0x3f   : > { %1087 = vmatmul.bf16.vlgmr.msra.gmra.mxu0 %v4244_v6  ;;  %1107 = vmatmul.bf16.vlgmr.msra.gmra.mxu2 %v4250_v8  ;;  %v3549_v6 = vld [vmem:[%s5143_s1 + $0x160] sm:$0xff] }
  0x40   : > { %1177 = vmatpush.bf16.msrb.mxu2 %v3552_v39  ;;  %1136 = vmatmul.bf16.vlgmr.msra.gmra.mxu1 %v737_v43  ;;  %v3509_v8 = vld [vmem:[%s5143_s1 + $0x20] sm:$0xff]  ;;  %v3506_v39 = vld [vmem:[%s5143_s1 + $0x8] sm:$0xff]  ;;  %v758_v43 = vshll.u32 %v4410_v33, 16 }
  0x41   : > { %1370 = vmatpush.bf16.msrb.mxu3 %v3512_v40  ;;  %1419 = vmatpush.bf16.msrb.mxu0 %v3520_v45  ;;  %v3882_v40 = vld [vmem:[%s4241_s13 + $0xc] sm:$0xe]  ;;  %v803_v45 = vrot.slane %v801_v35, 1  ;;  %v320_v35 = vld [vmem:[%s4241_s13 + $0x8] sm:$0x1] }
  0x42   : > { %1156 = vmatmul.bf16.vlgmr.msra.gmra.mxu3 %v785_v44  ;;  %1468 = vmatpush.bf16.msrb.mxu1 %v3528_v46  ;;  %v799_v44 = vshrl.u32 %v4368_v10, 16  ;;  %v806_v46 = vshll.u32 %v4412_v34, 16  ;;  %v3883_v54 = vor.u32 %v3882_v40, %v4247_v7  ;;  %v3521_v7 = vld [vmem:[%s5143_s1 + $0x80] sm:$0xff] }
  0x44   : > { %1178 = vmatpush.bf16.msrb.mxu2 %v3551_v49  ;;  %v3522_v49 = vld [vmem:[%s5143_s1 + $0x88] sm:$0xff]  ;;  %v804_v60 = vor.u32 %v803_v45, %v799_v44  ;;  %v808_v61 = vrot.slane %v806_v46, 1  ;;  %v3575_v44 = vld [vmem:[%s5143_s1 + $0x230] sm:$0xff]  ;;  %v3885_v46 = vld [vmem:[%s4241_s13 + $0x24] sm:$0xe] }
  0x45   : > { %1371 = vmatpush.bf16.msrb.mxu3 %v3511_v50  ;;  %1420 = vmatpush.bf16.msrb.mxu0 %v3519_v56  ;;  %v3545_v50 = vld [vmem:[%s5143_s1 + $0x140] sm:$0xff]  ;;  %v855_v56 = vrot.slane %v4275_v20, 1  ;;  %v3003_v20 = vld [vmem:[%s4241_s13 + $0x68] sm:$0x1]  ;;  %v3583_v45 = vld [vmem:[%s5145_s2 + $0x30] sm:$0xff] }
  0x46   : > { %1469 = vmatpush.bf16.msrb.mxu1 %v3527_v57  ;;  %v854_v57 = vrot.slane %v3883_v54, 1 }
  0x48   : > { %1179 = vmatpush.bf16.msrb.mxu2 %v3550_v58  ;;  %v756_v58 = vor.u32 %v755_v42, %v751_v41  ;;  %v4455_v0 = vsel %vm537_vm1, %v854_v57, %v855_v56  ;;  %v3559_v42 = vld [vmem:[%s5143_s1 + $0x1b0] sm:$0xff]  ;;  %v3886_v56 = vor.u32 %v3885_v46, %v4359_v5  ;;  %v861_v57 = vrot.slane %v4410_v33, 1  ;;  %v3888_v33 = vld [vmem:[%s4241_s13 + $0xc] sm:$0xe]  ;;  %v3721_v46 = vld [vmem:[%s4241_s13 + $0x18] sm:$0xf0] }
  0x49   : > { %1372 = vmatpush.bf16.msrb.mxu3 %v3510_v59  ;;  %1421 = vmatpush.bf16.msrb.mxu0 %v3518_v2  ;;  %v760_v59 = vrot.slane %v758_v43, 1  ;;  %v809_v2 = vsel %vm408_vm0, %v804_v60, %v808_v61  ;;  %v3567_v43 = vld [vmem:[%s5143_s1 + $0x1f0] sm:$0xff] }
  0x4a   : > { %1470 = vmatpush.bf16.msrb.mxu1 %v3526_v3  ;;  %v4460_v3 = vld [vmem:[%s4241_s13 + $0x30] sm:$0xff]   ;;  %v860_v61 = vrot.slane %v3886_v56, 1 }
  0x4b   : > { %v761_v1 = vsel %vm408_vm0, %v756_v58, %v760_v59  ;;  %v765_v15 = vshll.u32 %v4460_v3, 16  ;;  %v306_v59 = vld [vmem:[%s4241_s13 + $0xc] sm:$0xff]  }
  0x4c   : > { %1180 = vmatpush.bf16.msrb.mxu2 %v3549_v6  ;;  %v713_v6 = vunpack.c.l.b16 %v2999_v63  ;;  %v3887_v60 = vld [vmem:[%s4241_s13 + $0xc] sm:$0xf0]  ;;  %v4513_v63 = vsel %vm537_vm1, %v860_v61, %v861_v57 }
  0x4d   : > { %1373 = vmatpush.bf16.msrb.mxu3 %v3509_v8  ;;  %1422 = vmatpush.bf16.msrb.mxu0 %v3517_v17  ;;  %v717_v8 = vunpack.c.l.b16 %v3003_v20  ;;  %v3568_v17 = vld [vmem:[%s5143_s1 + $0x1f8] sm:$0xff] }
  0x4e   : > { %1471 = vmatpush.bf16.msrb.mxu1 %v3525_v18  ;;  %v3576_v18 = vld [vmem:[%s5143_s1 + $0x238] sm:$0xff] }
  0x4f   : > { %1092 = vmatmul.bf16.gmra.mxu0 %v4314_v47  ;;  %1112 = vmatmul.bf16.gmra.mxu2 %v4323_v51 }
  0x50   : > { %1181 = vmatpush.bf16.msrb.mxu2 %v3548_v21  ;;  %1141 = vmatmul.bf16.gmra.mxu1 %v749_v24  ;;  %v3584_v21 = vld [vmem:[%s5145_s2 + $0x38] sm:$0xff]  ;;  %v767_v24 = vrot.slane %v765_v15, 1  ;;  %v424_v15 = vshll.u32 %v306_v59, 16 }
  0x51   : > { %1374 = vmatpush.bf16.msrb.mxu3 %v3508_v23  ;;  %1423 = vmatpush.bf16.msrb.mxu0 %v3516_v28  ;;  %v763_v23 = vshrl.u32 %v4460_v3, 16 }
  0x52   : > { %1161 = vmatmul.bf16.gmra.mxu3 %v797_v25  ;;  %1472 = vmatpush.bf16.msrb.mxu1 %v3524_v29  ;;  %v811_v25 = vshrl.u32 %v3733_v13, 16 }
  0x53   : > { %v4485_v29 = vor.u32 %v767_v24, %v763_v23  ;;  %v422_v24 = vshrl.u32 %v306_v59, 16 }
  0x54   : > { %1182 = vmatpush.bf16.msrb.mxu2 %v3547_v30 }
  0x55   : > { %1375 = vmatpush.bf16.msrb.mxu3 %v3507_v31  ;;  %1424 = vmatpush.bf16.msrb.mxu0 %v3515_v36  ;;  %v816_v31 = vor.u32 %v815_v26, %v811_v25  ;;  %v3588_v36 = vld [vmem:[%s4241_s13] sm:$0xff]   ;;  %v426_v25 = vrot.slane %v424_v15, 1  ;;  %v3572_v15 = vld [vmem:[%s5143_s1 + $0x218] sm:$0xff] }
  0x56   : > { %1473 = vmatpush.bf16.msrb.mxu1 %v3523_v37  ;;  %v392_v37 = vunpack.c.l.b16 %v320_v35  ;;  %v412_v40 = vshll.u32 %v3588_v36, 16 }
  0x58   : > { %1183 = vmatpush.bf16.msrb.mxu2 %v3546_v38  ;;  %v400_v41 = vpack.c.b16 %v392_v37, %v392_v37  ;;  %v322_v37 = vld [vmem:[%s4241_s13 + $0x20] sm:$0x1] }
  0x59   : > { %1376 = vmatpush.bf16.msrb.mxu3 %v3506_v39  ;;  %1425 = vmatpush.bf16.msrb.mxu0 %v3514_v48  ;;  %v3718_v48 = vld [vmem:[%s4241_s13] sm:$0xf0] }
  0x5a   : > { %1474 = vmatpush.bf16.msrb.mxu1 %v3522_v49  ;;  %v3719_v49 = vld [vmem:[%s4241_s13] sm:$0xe]  ;;  %v417_v54 = vshll.u32 %v400_v41, 16 }
  0x5b   : > { %v3720_v58 = vor.u32 %v3719_v49, %v3718_v48  ;;  %v3722_v48 = vld [vmem:[%s4241_s13 + $0x18] sm:$0xe] }
  0x5c   : > { %1184 = vmatpush.bf16.msrb.mxu2 %v3545_v50  ;;  %v410_v50 = vshrl.u32 %v3588_v36, 16 }
  0x5d   : > { %1377 = vmatpush.bf16.msrb.mxu3 %v3505_v52  ;;  %1426 = vmatpush.bf16.msrb.mxu0 %v3513_v62  ;;  %v414_v52 = vrot.slane %v412_v40, 1  ;;  %v538_v20 = vrot.slane %v3720_v58, 1  ;;  %v394_v40 = vunpack.c.l.b16 %v322_v37 }
  0x5e   : > { %1475 = vmatpush.bf16.msrb.mxu1 %v3521_v7  ;;  %v419_v7 = vrot.slane %v417_v54, 1  ;;  %v3890_v54 = vld [vmem:[%s4241_s13 + $0x24] sm:$0xf0] }
  0x5f   : > { %1097 = vmatmul.bf16.gmra.mxu0 %v4356_v4  ;;  %1117 = vmatmul.bf16.gmra.mxu2 %v4368_v10  ;;  %v4475_v4 = vpack.c.b16 %v713_v6, %v713_v6  ;;  %v4477_v10 = vpack.c.b16 %v717_v8, %v717_v8  ;;  %v415_v62 = vor.u32 %v414_v52, %v410_v50  ;;  %v310_v52 = vld [vmem:[%s4241_s13 + $0x24] sm:$0xff]  }
  0x60   : > { %1146 = vmatmul.bf16.gmra.mxu1 %v761_v1  ;;  %1978 = vmatpush.bf16.msra.mxu2 %v3560_v16  ;;  %v539_v1 = vrot.slane %v400_v41, 1  ;;  %v3558_v16 = vld [vmem:[%s5143_s1 + $0x1a8] sm:$0xff]  ;;  %v3723_v50 = vor.u32 %v3722_v48, %v3721_v46  ;;  %v325_v48 = vld [vmem:[%s4241_s13 + $0x44] sm:$0x1] }
  0x61   : > { %2027 = vmatpush.bf16.msra.mxu3 %v3568_v17  ;;  %2076 = vmatpush.bf16.msra.mxu0 %v3576_v18  ;;  %v770_v27 = vshll.u32 %v4475_v4, 16  ;;  %v818_v28 = vshll.u32 %v4477_v10, 16  ;;  %v420_v6 = vsel %vm408_vm0, %v415_v62, %v419_v7  ;;  %v3566_v17 = vld [vmem:[%s5143_s1 + $0x1e8] sm:$0xff]  ;;  %v3891_v7 = vld [vmem:[%s4241_s13 + $0x24] sm:$0xe] }
  0x62   : > { %1166 = vmatmul.bf16.gmra.mxu3 %v809_v2  ;;  %2549 = vmatpush.bf16.msra.mxu1 %v3584_v21  ;;  %v321_v2 = vld [vmem:[%s4241_s13 + $0x14] sm:$0x1]  ;;  %v540_v5 = vsel %vm537_vm1, %v538_v20, %v539_v1  ;;  %v3574_v18 = vld [vmem:[%s5143_s1 + $0x228] sm:$0xff]  ;;  %v3735_v21 = vld [vmem:[%s4241_s13 + $0x18] sm:$0xe]  ;;  %v544_v57 = vrot.slane %v3723_v50, 1 }
  0x63   : > { %v772_v30 = vrot.slane %v770_v27, 1  ;;  %v820_v32 = vrot.slane %v818_v28, 1  ;;  %v393_v8 = vunpack.c.l.b16 %v321_v2  ;;  %v3736_v23 = vor.u32 %v3735_v21, %v3734_v19  ;;  %v3556_v2 = vld [vmem:[%s5143_s1 + $0x198] sm:$0xff] }
  0x64   : > { %1979 = vmatpush.bf16.msra.mxu2 %v3559_v42  ;;  %v3889_v27 = vor.u32 %v3888_v33, %v3887_v60  ;;  %v3557_v42 = vld [vmem:[%s5143_s1 + $0x1a0] sm:$0xff]  ;;  %v448_v1 = vshll.u32 %v310_v52, 16 }
  0x65   : > { %v773_v38 = vsel %vm408_vm0, %v4485_v29, %v772_v30  ;;  %v821_v39 = vsel %vm408_vm0, %v816_v31, %v820_v32  ;;  %2028 = vmatpush.bf16.msra.mxu3 %v3567_v43  ;;  %2077 = vmatpush.bf16.msra.mxu0 %v3575_v44  ;;  %v857_v28 = vrot.slane %v3736_v23, 1  ;;  %v858_v30 = vrot.slane %v4328_v53, 1  ;;  %v3565_v43 = vld [vmem:[%s5143_s1 + $0x1e0] sm:$0xff]  ;;  %v324_v23 = vld [vmem:[%s4241_s13 + $0x38] sm:$0x1] }
  0x66   : > { %2550 = vmatpush.bf16.msra.mxu1 %v3583_v45  ;;  %v427_v31 = vor.u32 %v426_v25, %v422_v24  ;;  %v541_v35 = vrot.slane %v3889_v27, 1  ;;  %v402_v53 = vpack.c.b16 %v394_v40, %v394_v40  ;;  %v3573_v44 = vld [vmem:[%s5143_s1 + $0x220] sm:$0xff]  ;;  %v396_v27 = vunpack.c.l.b16 %v324_v23 }
  0x67   : > { %v3581_v45 = vld [vmem:[%s5145_s2 + $0x20] sm:$0xff] }
  0x68   : > { %1980 = vmatpush.bf16.msra.mxu2 %v3558_v16  ;;  %v441_v49 = vshll.u32 %v402_v53, 16  ;;  %v545_v58 = vrot.slane %v402_v53, 1  ;;  %v4592_v40 = vld [vmem:[%s4241_s13 + $0x3c] sm:$0xff]   ;;  %v3571_v53 = vld [vmem:[%s5143_s1 + $0x210] sm:$0xff] }
  0x69   : > { %2029 = vmatpush.bf16.msra.mxu3 %v3566_v17  ;;  %2078 = vmatpush.bf16.msra.mxu0 %v3574_v18  ;;  %v864_v17 = vrot.slane %v4475_v4, 1 }
  0x6a   : > { %v443_v56 = vrot.slane %v441_v49, 1  ;;  %v546_v62 = vsel %vm537_vm1, %v544_v57, %v545_v58  ;;  %v3897_v58 = vld [vmem:[%s4241_s13 + $0x3c] sm:$0xe] }
  0x6c   : > { %1981 = vmatpush.bf16.msra.mxu2 %v3557_v42  ;;  %v444_v60 = vsel %vm408_vm0, %v4373_v12, %v443_v56  ;;  %v3564_v12 = vld [vmem:[%s5143_s1 + $0x1d8] sm:$0xff] }
  0x6d   : > { %2030 = vmatpush.bf16.msra.mxu3 %v3565_v43  ;;  %2079 = vmatpush.bf16.msra.mxu0 %v3573_v44  ;;  %v867_v43 = vrot.slane %v4278_v22, 1 }
  0x6f   : > { %1102 = vmatmul.bf16.gmra.mxu0 %v4460_v3  ;;  %1122 = vmatmul.bf16.gmra.mxu2 %v3733_v13  ;;  %v401_v13 = vpack.c.b16 %v393_v8, %v393_v8  ;;  %v3738_v8 = vld [vmem:[%s4241_s13 + $0x30] sm:$0xe] }
  0x70   : > { %1151 = vmatmul.bf16.gmra.mxu1 %v773_v38  ;;  %v859_v38 = vsel %vm537_vm1, %v857_v28, %v858_v30  ;;  %1982 = vmatpush.bf16.msra.mxu2 %v3556_v2  ;;  %v3580_v28 = vld [vmem:[%s5145_s2 + $0x18] sm:$0xff]  ;;  %v404_v30 = vpack.c.b16 %v396_v27, %v396_v27 }
  0x71   : > { %v429_v26 = vshll.u32 %v401_v13, 16  ;;  %2031 = vmatpush.bf16.msra.mxu3 %v3564_v12  ;;  %2080 = vmatpush.bf16.msra.mxu0 %v3572_v15 }
  0x72   : > { %1171 = vmatmul.bf16.gmra.mxu3 %v821_v39  ;;  %v551_v46 = vrot.slane %v404_v30, 1 }
  0x73   : > { %v431_v32 = vrot.slane %v429_v26, 1  ;;  %v3894_v26 = vld [vmem:[%s4241_s13 + $0x3c] sm:$0xe] }
  0x74   : > { %v3895_v37 = vor.u32 %v3894_v26, %v4253_v9 }
  0x75   : > { %v432_v39 = vsel %vm408_vm0, %v427_v31, %v431_v32  ;;  %v3555_v31 = vld [vmem:[%s5143_s1 + $0x190] sm:$0xff]  ;;  %2081 = vmatpush.bf16.msra.mxu0 %v3571_v53  ;;  %v3728_v53 = vld [vmem:[%s4241_s13 + $0x48] sm:$0xe] }
  0x76   : > { %v3563_v32 = vld [vmem:[%s5143_s1 + $0x1d0] sm:$0xff]  ;;  %1983 = vmatpush.bf16.msra.mxu2 %v3555_v31  ;;  %v866_v42 = vrot.slane %v3895_v37, 1  ;;  %v3553_v37 = vld [vmem:[%s5143_s1 + $0x180] sm:$0xff] }
  0x77   : > { %2032 = vmatpush.bf16.msra.mxu3 %v3563_v32  ;;  %v3900_v32 = vld [vmem:[%s4241_s13 + $0x54] sm:$0xe] }
  0x78   : > { %v868_v49 = vsel %vm537_vm1, %v866_v42, %v867_v43 }
  0x7f   : > { %1185 = vmatmul.bf16.vlgmr.msrb.gmra.mxu2 %v4455_v0  ;;  %1427 = vmatmul.bf16.vlgmr.msrb.gmra.mxu0 %v420_v6  ;;  %v3582_v0 = vld [vmem:[%s5145_s2 + $0x28] sm:$0xff]  ;;  %v3737_v6 = vld [vmem:[%s4241_s13 + $0x30] sm:$0xf0] }
  0x80   : > { %1476 = vmatmul.bf16.vlgmr.msrb.gmra.mxu1 %v540_v5  ;;  %v446_v5 = vshrl.u32 %v310_v52, 16 }
  0x81   : > { %2551 = vmatpush.bf16.msra.mxu1 %v3582_v0 }
  0x82   : > { %1378 = vmatmul.bf16.vlgmr.msrb.gmra.mxu3 %v3588_v36  ;;  %v542_v36 = vrot.slane %v401_v13, 1  ;;  %v3892_v13 = vor.u32 %v3891_v7, %v3890_v54  ;;  %v3579_v54 = vld [vmem:[%s5145_s2 + $0x10] sm:$0xff]  ;;  %v3562_v7 = vld [vmem:[%s5143_s1 + $0x1c8] sm:$0xff] }
  0x83   : > { %2033 = vmatpush.bf16.msra.mxu3 %v3562_v7 }
  0x84   : > { %v543_v41 = vsel %vm537_vm1, %v541_v35, %v542_v36  ;;  %v547_v21 = vrot.slane %v3892_v13, 1  ;;  %v3724_v35 = vld [vmem:[%s4241_s13 + $0x30] sm:$0xf0]  ;;  %v3725_v36 = vld [vmem:[%s4241_s13 + $0x30] sm:$0xe]  ;;  %v3570_v13 = vld [vmem:[%s5143_s1 + $0x208] sm:$0xff] }
  0x85   : > { %2552 = vmatpush.bf16.msra.mxu1 %v3581_v45  ;;  %2082 = vmatpush.bf16.msra.mxu0 %v3570_v13 }
  0x89   : > { %2553 = vmatpush.bf16.msra.mxu1 %v3580_v28 }
  0x8d   : > { %2554 = vmatpush.bf16.msra.mxu1 %v3579_v54 }
  0x8f   : > { %1190 = vmatmul.bf16.gmra.mxu2 %v859_v38  ;;  %1432 = vmatmul.bf16.gmra.mxu0 %v432_v39  ;;  %v465_v38 = vshll.u32 %v404_v30, 16  ;;  %v3726_v39 = vor.u32 %v3725_v36, %v3724_v35 }
  0x90   : > { %1481 = vmatmul.bf16.gmra.mxu1 %v543_v41  ;;  %v3896_v41 = vld [vmem:[%s4241_s13 + $0x3c] sm:$0xf0] }
  0x91   : > { %v467_v44 = vrot.slane %v465_v38, 1  ;;  %v550_v45 = vrot.slane %v3726_v39, 1  ;;  %v3561_v38 = vld [vmem:[%s5143_s1 + $0x1c0] sm:$0xff] }
  0x92   : > { %1383 = vmatmul.bf16.gmra.mxu3 %v306_v59  ;;  %v323_v59 = vld [vmem:[%s4241_s13 + $0x2c] sm:$0x1] }
  0x93   : > { %v395_v61 = vunpack.c.l.b16 %v323_v59  ;;  %v468_v50 = vsel %vm408_vm0, %v4485_v29, %v467_v44  ;;  %v552_v22 = vsel %vm537_vm1, %v550_v45, %v551_v46  ;;  %v3740_v59 = vld [vmem:[%s4241_s13 + $0x48] sm:$0xf0]  ;;  %2034 = vmatpush.bf16.msra.mxu3 %v3561_v38  ;;  %v3901_v44 = vor.u32 %v3900_v32, %v4371_v11  ;;  %v4654_v46 = vld [vmem:[%s4241_s13 + $0x54] sm:$0xff]   ;;  %v3270_v38 = vld [vmem:[%s4241_s13 + $0x20] sm:$0x1] }
  0x94   : > { %v496_v13 = vshll.u32 %v4654_v46, 16  ;;  %v876_v32 = vrot.slane %v4477_v10, 1 }
  0x95   : > { %v403_v20 = vpack.c.b16 %v395_v61, %v395_v61  ;;  %v472_v61 = vshll.u32 %v4592_v40, 16  ;;  %v872_v54 = vrot.slane %v3901_v44, 1 }
  0x97   : > { %v453_v33 = vshll.u32 %v403_v20, 16  ;;  %v548_v0 = vrot.slane %v403_v20, 1 }
  0x99   : > { %v455_v19 = vrot.slane %v453_v33, 1  ;;  %v549_v4 = vsel %vm537_vm1, %v547_v21, %v548_v0  ;;  %v326_v0 = vld [vmem:[%s4241_s13 + $0x50] sm:$0x1] }
  0x9f   : > { %1195 = vmatmul.bf16.gmra.mxu2 %v4513_v63  ;;  %1437 = vmatmul.bf16.gmra.mxu0 %v444_v60  ;;  %v3739_v63 = vor.u32 %v3738_v8, %v3737_v6  ;;  %v3741_v60 = vld [vmem:[%s4241_s13 + $0x48] sm:$0xe]  ;;  %v470_v6 = vshrl.u32 %v4592_v40, 16  ;;  %v474_v8 = vrot.slane %v472_v61, 1 }
  0xa0   : > { %1486 = vmatmul.bf16.gmra.mxu1 %v546_v62  ;;  %v3554_v62 = vld [vmem:[%s5143_s1 + $0x188] sm:$0xff]  ;;  %v3742_v2 = vor.u32 %v3741_v60, %v3740_v59 }
  0xa1   : > { %v863_v16 = vrot.slane %v3739_v63, 1  ;;  %1984 = vmatpush.bf16.msra.mxu2 %v3554_v62  ;;  %v3577_v62 = vld [vmem:[%s5145_s2] sm:$0xff] }
  0xa2   : > { %1388 = vmatmul.bf16.gmra.mxu3 %v4314_v47  ;;  %v450_v47 = vrot.slane %v448_v1, 1  ;;  %v869_v15 = vrot.slane %v3742_v2, 1 }
  0xa3   : > { %v865_v24 = vsel %vm537_vm1, %v863_v16, %v864_v17  ;;  %v870_v16 = vrot.slane %v4331_v55, 1  ;;  %v475_v17 = vor.u32 %v474_v8, %v470_v6  ;;  %v3578_v55 = vld [vmem:[%s5145_s2 + $0x8] sm:$0xff]  ;;  %v3903_v8 = vld [vmem:[%s4241_s13 + $0x54] sm:$0xe] }
  0xa4   : > { %v451_v18 = vor.u32 %v450_v47, %v446_v5  ;;  %v3898_v47 = vor.u32 %v3897_v58, %v3896_v41  ;;  %2555 = vmatpush.bf16.msra.mxu1 %v3578_v55  ;;  %v3727_v41 = vld [vmem:[%s4241_s13 + $0x48] sm:$0xf0]  ;;  %v327_v58 = vld [vmem:[%s4241_s13 + $0x5c] sm:$0x1] }
  0xa5   : > { %v871_v27 = vsel %vm537_vm1, %v869_v15, %v870_v16  ;;  %1985 = vmatpush.bf16.msra.mxu2 %v3553_v37  ;;  %v399_v61 = vunpack.c.l.b16 %v327_v58  ;;  %v3430_v15 = vld [vmem:[%s4241_s13 + $0xc] sm:$0xf]  ;;  %v3431_v16 = vld [vmem:[%s4241_s13 + $0x10] sm:$0xf] }
  0xa6   : > { %v456_v25 = vsel %vm408_vm0, %v451_v18, %v455_v19  ;;  %v553_v19 = vrot.slane %v3898_v47, 1 }
  0xa7   : > { %v407_v47 = vpack.c.b16 %v399_v61, %v399_v61 }
  0xa8   : > { %2556 = vmatpush.bf16.msra.mxu1 %v3577_v62 }
  0xa9   : > { %v560_v44 = vrot.slane %v407_v47, 1 }
  0xaf   : > { %1200 = vmatmul.bf16.gmra.mxu2 %v865_v24  ;;  %1442 = vmatmul.bf16.gmra.mxu0 %v456_v25 }
  0xb0   : > { %1491 = vmatmul.bf16.gmra.mxu1 %v549_v4  ;;  %v398_v4 = vunpack.c.l.b16 %v326_v0  ;;  %v501_v0 = vshll.u32 %v407_v47, 16  ;;  %v3433_v47 = vld [vmem:[%s4241_s13 + $0x18] sm:$0xf] }
  0xb2   : > { %1393 = vmatmul.bf16.gmra.mxu3 %v310_v52  ;;  %v397_v52 = vunpack.c.l.b16 %v325_v48  ;;  %v406_v36 = vpack.c.b16 %v398_v4, %v398_v4  ;;  %v3902_v48 = vld [vmem:[%s4241_s13 + $0x54] sm:$0xf0]  ;;  %v2275_v4 = vshrl.u32 %v3431_v16, 16  ;;  %v503_v37 = vrot.slane %v501_v0, 1 }
  0xb3   : > { %v3904_v55 = vor.u32 %v3903_v8, %v3902_v48 }
  0xb4   : > { %v405_v29 = vpack.c.b16 %v397_v52, %v397_v52  ;;  %v489_v45 = vshll.u32 %v406_v36, 16  ;;  %v3569_v52 = vld [vmem:[%s5143_s1 + $0x200] sm:$0xff]  ;;  %v557_v59 = vrot.slane %v406_v36, 1  ;;  %s3937_s1 = scalar_lea.hbm %s5125_s4, 256 }
  0xb5   : > { %2083 = vmatpush.bf16.msra.mxu0 %v3569_v52 }
  0xb6   : > { %v477_v63 = vshll.u32 %v405_v29, 16  ;;  %v554_v21 = vrot.slane %v405_v29, 1 }
  0xb8   : > { %v479_v18 = vrot.slane %v477_v63, 1  ;;  %v555_v31 = vsel %vm537_vm1, %v553_v19, %v554_v21  ;;  %v3743_v63 = vld [vmem:[%s4241_s13 + $0x60] sm:$0xf0]  ;;  %v494_v19 = vshrl.u32 %v4654_v46, 16  ;;  %v498_v21 = vrot.slane %v496_v13, 1 }
  0xb9   : > { %v3434_v13 = vld [vmem:[%s4241_s13 + $0x1c] sm:$0xf] }
  0xba   : > { %v480_v28 = vsel %vm408_vm0, %v475_v17, %v479_v18  ;;  %v499_v36 = vor.u32 %v498_v21, %v494_v19 }
  0xbc   : > { %v1088_v9 = vpop.f32.mrf.mxu0  ;;  %v504_v52 = vsel %vm408_vm0, %v499_v36, %v503_v37 }
  0xbd   : > { %v1137_v56 = vpop.f32.mrf.mxu1 }
  0xbe   : > { %v4607_v57 = vadd.f32 %v1137_v56, %v1088_v9  ;;  %v873_v56 = vrot.slane %v4412_v34, 1 }
  0xbf   : > { %1205 = vmatmul.bf16.gmra.mxu2 %v868_v49  ;;  %1447 = vmatmul.bf16.gmra.mxu0 %v468_v50  ;;  %v3729_v49 = vor.u32 %v3728_v53, %v3727_v41 }
  0xc0   : > { %1496 = vmatmul.bf16.gmra.mxu1 %v552_v22  ;;  %v491_v22 = vrot.slane %v489_v45, 1  ;;  %v874_v34 = vsel %vm537_vm1, %v872_v54, %v873_v56  ;;  %v3432_v45 = vld [vmem:[%s4241_s13 + $0x14] sm:$0x1]  ;;  %v1609_v54 = vunpack.c.l.b16 %v3270_v38 }
  0xc1   : > { %v556_v11 = vrot.slane %v3729_v49, 1 }
  0xc2   : > { %1398 = vmatmul.bf16.gmra.mxu3 %v4460_v3  ;;  %v1108_v20 = vpop.f32.mrf.mxu2 }
  0xc4   : > { %v1090_v3 = vpop.f32.mrf.mxu0 }
  0xc5   : > { %v1157_v1 = vpop.f32.mrf.mxu3  ;;  %v1139_v5 = vpop.f32.mrf.mxu1 }
  0xc6   : > { %v4620_v12 = vadd.f32 %v1157_v1, %v1108_v20  ;;  %v4623_v33 = vadd.f32 %v1139_v5, %v1090_v3  ;;  %v492_v1 = vsel %vm408_vm0, %v4375_v14, %v491_v22  ;;  %v558_v3 = vsel %vm537_vm1, %v556_v11, %v557_v59  ;;  %v3744_v5 = vld [vmem:[%s4241_s13 + $0x60] sm:$0xe]  ;;  %v4695_v22 = vld [vmem:[%s4241_s13 + $0x18] sm:$0xff]  }
  0xc7   : > { %v3745_v17 = vor.u32 %v3744_v5, %v3743_v63  ;;  %v2281_v59 = vshll.u32 %v3432_v45, 16  ;;  %v1628_v62 = vshll.u32 %v4695_v22, 16 }
  0xc9   : > { %v2283_v8 = vrot.slane %v2281_v59, 5 }
  0xca   : > { %v1110_v23 = vpop.f32.mrf.mxu2 }
  0xcc   : > { %v1093_v26 = vpop.f32.mrf.mxu0 }
  0xcd   : > { %v1159_v24 = vpop.f32.mrf.mxu3  ;;  %v1142_v30 = vpop.f32.mrf.mxu1 }
  0xce   : > { %v4630_v25 = vadd.f32 %v1159_v24, %v1110_v23  ;;  %v4639_v35 = vadd.f32 %v1142_v30, %v1093_v26  ;;  %v2262_v23 = vshrl.u32 %v3430_v15, 16 }
  0xcf   : > { %1210 = vmatmul.bf16.gmra.mxu2 %v871_v27  ;;  %1452 = vmatmul.bf16.gmra.mxu0 %v480_v28  ;;  %v2265_v27 = vshll.u32 %v3430_v15, 16  ;;  %v2271_v28 = vshll.u32 %v3431_v16, 16  ;;  %v1626_v16 = vshrl.u32 %v4695_v22, 16 }
  0xd0   : > { %1501 = vmatmul.bf16.gmra.mxu1 %v555_v31  ;;  %v875_v31 = vrot.slane %v3745_v17, 1 }
  0xd1   : > { %v2267_v41 = vrot.slane %v2265_v27, 5  ;;  %v2273_v53 = vrot.slane %v2271_v28, 5  ;;  %v3905_v27 = vld [vmem:[%s4241_s13 + $0x24] sm:$0xf0]  ;;  %v2286_v28 = vshrl.u32 %v3433_v47, 16 }
  0xd2   : > { %1403 = vmatmul.bf16.gmra.mxu3 %v4592_v40  ;;  %v1113_v39 = vpop.f32.mrf.mxu2  ;;  %v877_v48 = vsel %vm537_vm1, %v875_v31, %v876_v32 }
  0xd4   : > { %v1095_v40 = vpop.f32.mrf.mxu0 }
  0xd5   : > { %v1162_v42 = vpop.f32.mrf.mxu3  ;;  %v1144_v9 = vpop.f32.mrf.mxu1 }
  0xd6   : > { %v4650_v43 = vadd.f32 %v1162_v42, %v1113_v39  ;;  %v4657_v50 = vadd.f32 %v1144_v9, %v1095_v40  ;;  %v2264_v39 = vrot.slane %v2262_v23, 4  ;;  %v2277_v42 = vrot.slane %v2275_v4, 4 }
  0xd7   : > { %v559_v40 = vrot.slane %v3904_v55, 1  ;;  %v2289_v4 = vshll.u32 %v3433_v47, 16  ;;  %v2299_v55 = vshrl.u32 %v3434_v13, 16 }
  0xd8   : > { %v2268_v58 = vor.u32 %v2267_v41, %v2264_v39  ;;  %v2278_v11 = vor.u32 %v2277_v42, %v2273_v53 }
  0xd9   : > { %v2291_v42 = vrot.slane %v2289_v4, 5 }
  0xda   : > { %v1115_v60 = vpop.f32.mrf.mxu2 }
  0xdc   : > { %v1098_v20 = vpop.f32.mrf.mxu0 }
  0xdd   : > { %v1164_v29 = vpop.f32.mrf.mxu3  ;;  %v1147_v2 = vpop.f32.mrf.mxu1 }
  0xde   : > { %v4667_v7 = vadd.f32 %v1164_v29, %v1115_v60  ;;  %v4673_v6 = vadd.f32 %v1147_v2, %v1098_v20  ;;  %v561_v29 = vsel %vm537_vm1, %v559_v40, %v560_v44  ;;  %v1617_v20 = vpack.c.b16 %v1609_v54, %v1609_v54  ;;  %v3906_v54 = vld [vmem:[%s4241_s13 + $0x24] sm:$0xe] }
  0xdf   : > { %1215 = vmatmul.bf16.gmra.mxu2 %v874_v34  ;;  %1457 = vmatmul.bf16.gmra.mxu0 %v492_v1  ;;  %v3750_v34 = vld [vmem:[%s4241_s13 + $0x18] sm:$0xf0]  ;;  %v3751_v1 = vld [vmem:[%s4241_s13 + $0x18] sm:$0xe]  ;;  %v2269_v2 = vrot.slane %v2268_v58, 4  ;;  %v2301_v44 = vrot.slane %v2299_v55, 4 }
  0xe0   : > { %1506 = vmatmul.bf16.gmra.mxu1 %v558_v3  ;;  %v2279_v3 = vrot.slane %v2278_v11, 4  ;;  %v1633_v17 = vshll.u32 %v1617_v20, 16  ;;  %v1754_v38 = vrot.slane %v1617_v20, 1 }
  0xe1   : > { %v2274_v21 = vsel %vm4704_vm4, %v2269_v2, %v2273_v53  ;;  %v2288_v53 = vrot.slane %v2286_v28, 4  ;;  %v3436_v2 = vld [vmem:[%s4241_s13 + $0x24] sm:$0xf] }
  0xe2   : > { %1408 = vmatmul.bf16.gmra.mxu3 %v4323_v51  ;;  %v1118_v14 = vpop.f32.mrf.mxu2  ;;  %v2284_v0 = vsel %vm4704_vm4, %v2279_v3, %v2283_v8  ;;  %v1635_v36 = vrot.slane %v1633_v17, 1  ;;  %v2469_v39 = vunpack.c.l.b16 %v2274_v21 }
  0xe3   : > { %v2470_v41 = vunpack.c.l.b16 %v2284_v0 }
  0xe4   : > { %v1100_v26 = vpop.f32.mrf.mxu0 }
  0xe5   : > { %v1167_v18 = vpop.f32.mrf.mxu3  ;;  %v1149_v51 = vpop.f32.mrf.mxu1  ;;  %v2485_v59 = vpack.c.b16 %v2470_v41, %v2469_v39 }
  0xe6   : > { %v4683_v24 = vadd.f32 %v1167_v18, %v1118_v14  ;;  %v4685_v30 = vadd.f32 %v1149_v51, %v1100_v26  ;;  %v1630_v14 = vrot.slane %v1628_v62, 1  ;;  %v4718_v26 = vld [vmem:[%s4241_s13 + $0x24] sm:$0xff]   ;;  %v2295_v51 = vshll.u32 %v3434_v13, 16 }
  0xe7   : > { %v2292_v62 = vor.u32 %v2291_v42, %v2288_v53  ;;  %v3437_v13 = vld [vmem:[%s4241_s13 + $0x28] sm:$0xf]  ;;  %v1638_v21 = vshrl.u32 %v4718_v26, 16 }
  0xe8   : > { %v1631_v32 = vor.u32 %v1630_v14, %v1626_v16  ;;  %v2297_v40 = vrot.slane %v2295_v51, 5  ;;  %v3907_v16 = vor.u32 %v3906_v54, %v3905_v27  ;;  %v2323_v28 = vshrl.u32 %v3437_v13, 16 }
  0xe9   : > { %v2293_v8 = vrot.slane %v2292_v62, 4 }
  0xea   : > { %v1120_v9 = vpop.f32.mrf.mxu2  ;;  %v2302_v20 = vor.u32 %v2301_v44, %v2297_v40  ;;  %v1756_v27 = vrot.slane %v3907_v16, 1  ;;  %v3754_v16 = vld [vmem:[%s4241_s13 + $0x30] sm:$0xe] }
  0xec   : > { %v1103_v56 = vpop.f32.mrf.mxu0 }
  0xed   : > { %v1169_v49 = vpop.f32.mrf.mxu3  ;;  %v1152_v60 = vpop.f32.mrf.mxu1 }
  0xee   : > { %v4692_v10 = vadd.f32 %v1169_v49, %v1120_v9  ;;  %v4698_v61 = vadd.f32 %v1152_v60, %v1103_v56  ;;  %v3271_v9 = vld [vmem:[%s4241_s13 + $0x2c] sm:$0x1]  ;;  %v3435_v49 = vld [vmem:[%s4241_s13 + $0x20] sm:$0x1] }
  0xef   : > { %1220 = vmatmul.bf16.gmra.mxu2 %v877_v48  ;;  %1462 = vmatmul.bf16.gmra.mxu0 %v504_v52  ;;  %v1636_v52 = vsel %vm408_vm0, %v1631_v32, %v1635_v36  ;;  %v2298_v32 = vsel %vm4704_vm4, %v2293_v8, %v2297_v40 }
  0xf0   : > { %1511 = vmatmul.bf16.gmra.mxu1 %v561_v29  ;;  %v1610_v29 = vunpack.c.l.b16 %v3271_v9  ;;  %v2471_v53 = vunpack.c.l.b16 %v2298_v32 }
  0xf2   : > { %1413 = vmatmul.bf16.gmra.mxu3 %v4654_v46  ;;  %v1123_v5 = vpop.f32.mrf.mxu2  ;;  %v3752_v46 = vor.u32 %v3751_v1, %v3750_v34  ;;  %v2305_v34 = vshll.u32 %v3435_v49, 16  ;;  %v1640_v1 = vshll.u32 %v4718_v26, 16  ;;  %v1618_v3 = vpack.c.b16 %v1610_v29, %v1610_v29 }
  0xf4   : > { %v1105_v19 = vpop.f32.mrf.mxu0  ;;  %v1753_v37 = vrot.slane %v3752_v46, 1  ;;  %v2307_v47 = vrot.slane %v2305_v34, 5  ;;  %v2310_v46 = vshrl.u32 %v3436_v2, 16  ;;  %v1642_v0 = vrot.slane %v1640_v1, 1 }
  0xf5   : > { %v1172_v15 = vpop.f32.mrf.mxu3  ;;  %v1154_v23 = vpop.f32.mrf.mxu1  ;;  %v1645_v55 = vshll.u32 %v1618_v3, 16 }
  0xf6   : > { %v4711_v18 = vadd.f32 %v1172_v15, %v1123_v5  ;;  %v4721_v31 = vadd.f32 %v1154_v23, %v1105_v19  ;;  %v1755_v11 = vsel %vm537_vm1, %v1753_v37, %v1754_v38  ;;  %v2303_v5 = vrot.slane %v2302_v20, 4  ;;  %v3272_v38 = vld [vmem:[%s4241_s13 + $0x38] sm:$0x1] }
  0xf7   : > { %v2313_v19 = vshll.u32 %v3436_v2, 16  ;;  %v2319_v23 = vshll.u32 %v3437_v13, 16  ;;  %v1757_v37 = vrot.slane %v1618_v3, 1  ;;  %v2312_v39 = vrot.slane %v2310_v46, 4 }
  0xf8   : > { %v1643_v49 = vor.u32 %v1642_v0, %v1638_v21  ;;  %v1611_v54 = vunpack.c.l.b16 %v3272_v38  ;;  %v4765_v38 = vld [vmem:[%s4241_s13 + $0x3c] sm:$0xff]  }
  0xf9   : > { %v2315_v41 = vrot.slane %v2313_v19, 5  ;;  %v2321_v44 = vrot.slane %v2319_v23, 5  ;;  %v1758_v20 = vsel %vm537_vm1, %v1756_v27, %v1757_v37  ;;  %v3439_v19 = vld [vmem:[%s4241_s13 + $0x30] sm:$0xf] }
  0xfa   : > { %v1125_v45 = vpop.f32.mrf.mxu2  ;;  %v2334_v27 = vshrl.u32 %v3439_v19, 16 }
  0xfb   : > { %v2316_v29 = vor.u32 %v2315_v41, %v2312_v39  ;;  %v4768_v39 = vld [vmem:[%s4241_s13 + $0x3c] sm:$0xf0]  ;;  %v2337_v41 = vshll.u32 %v3439_v19, 16 }
  0xfc   : > { %v1428_v58 = vpop.f32.mrf.mxu0 }
  0xfd   : > { %v1174_v48 = vpop.f32.mrf.mxu3  ;;  %v1477_v60 = vpop.f32.mrf.mxu1  ;;  %v2317_v13 = vrot.slane %v2316_v29, 4  ;;  %v2339_v29 = vrot.slane %v2337_v41, 5 }
  0xfe   : > { %v4727_v56 = vadd.f32 %v1174_v48, %v1125_v45  ;;  %v2325_v45 = vrot.slane %v2323_v28, 4  ;;  %v1647_v48 = vrot.slane %v1645_v55, 1  ;;  %v3440_v28 = vld [vmem:[%s4241_s13 + $0x34] sm:$0xf] }
  0xff   : > { %1986 = vmatmul.bf16.vlgmr.msra.gmra.mxu2 %v4695_v22  ;;  %2084 = vmatmul.bf16.vlgmr.msra.gmra.mxu0 %v1755_v11 }
 0x100   : > { %2557 = vmatmul.bf16.vlgmr.msra.gmra.mxu1 %v2485_v59  ;;  %v2326_v1 = vor.u32 %v2325_v45, %v2321_v44  ;;  %v1648_v8 = vsel %vm408_vm0, %v1643_v49, %v1647_v48 }
 0x102   : > { %2035 = vmatmul.bf16.vlgmr.msra.gmra.mxu3 %v1636_v52  ;;  %v1186_v15 = vpop.f32.mrf.mxu2  ;;  %v3438_v52 = vld [vmem:[%s4241_s13 + $0x2c] sm:$0x1] }
 0x103   : > { %v1187_v14 = vadd.f32 %v1186_v15, %v4607_v57  ;;  %v2308_v57 = vsel %vm4704_vm4, %v2303_v5, %v2307_v47  ;;  %v3753_v15 = vld [vmem:[%s4241_s13 + $0x30] sm:$0xf0] }
 0x104   : > { %v1430_v22 = vpop.f32.mrf.mxu0  ;;  %v2472_v42 = vunpack.c.l.b16 %v2308_v57  ;;  %v3755_v55 = vor.u32 %v3754_v16, %v3753_v15  ;;  %v2322_v57 = vsel %vm4704_vm4, %v2317_v13, %v2321_v44  ;;  %v3909_v15 = vld [vmem:[%s4241_s13 + $0x3c] sm:$0xe] }
 0x105   : > { %v1379_v17 = vpop.f32.mrf.mxu3  ;;  %v1479_v51 = vpop.f32.mrf.mxu1 }
 0x106   : > { %v1380_v4 = vadd.f32 %v1379_v17, %v1187_v14  ;;  %v2486_v34 = vpack.c.b16 %v2472_v42, %v2471_v53  ;;  %v2327_v14 = vrot.slane %v2326_v1, 4  ;;  %v2343_v53 = vshll.u32 %v3440_v28, 16 }
 0x107   : > { %v1759_v48 = vrot.slane %v3755_v55, 1  ;;  %v3443_v55 = vld [vmem:[%s4241_s13 + $0x40] sm:$0xf] }
 0x108   : > { %v1429_v36 = vadd.f32 %v1428_v58, %v1380_v4  ;;  %v4746_v58 = vld [vmem:[%s4241_s13 + $0x30] sm:$0xff]  }
 0x109   : > { %v1652_v5 = vshll.u32 %v4746_v58, 16  ;;  %v1650_v0 = vshrl.u32 %v4746_v58, 16 }
 0x10a   : > { %v4741_v9 = vadd.f32 %v1477_v60, %v1429_v36  ;;  %v1188_v40 = vpop.f32.mrf.mxu2  ;;  %v2329_v60 = vshll.u32 %v3438_v52, 16  ;;  %v2473_v52 = vunpack.c.l.b16 %v2322_v57 }
 0x10b   : > { %v1189_v11 = vadd.f32 %v1188_v40, %v4623_v33  ;;  %v1619_v33 = vpack.c.b16 %v1611_v54, %v1611_v54  ;;  %v2336_v54 = vrot.slane %v2334_v27, 4 }
 0x10c   : > { %v1433_v62 = vpop.f32.mrf.mxu0  ;;  %v2331_v17 = vrot.slane %v2329_v60, 5  ;;  %v3441_v60 = vld [vmem:[%s4241_s13 + $0x38] sm:$0x1] }
 0x10d   : > { %v1381_v59 = vpop.f32.mrf.mxu3  ;;  %v1482_v3 = vpop.f32.mrf.mxu1  ;;  %v1657_v23 = vshll.u32 %v1619_v33, 16  ;;  %v1760_v44 = vrot.slane %v1619_v33, 1  ;;  %v2353_v19 = vshll.u32 %v3441_v60, 16 }
 0x10e   : > { %v1382_v2 = vadd.f32 %v1381_v59, %v1189_v11  ;;  %v3273_v59 = vld [vmem:[%s4241_s13 + $0x44] sm:$0x1] }
 0x10f   : > { %1991 = vmatmul.bf16.gmra.mxu2 %v4718_v26  ;;  %2089 = vmatmul.bf16.gmra.mxu0 %v1758_v20  ;;  %v1659_v45 = vrot.slane %v1657_v23, 1  ;;  %v2345_v20 = vrot.slane %v2343_v53, 5  ;;  %v1761_v33 = vsel %vm537_vm1, %v1759_v48, %v1760_v44  ;;  %v1612_v13 = vunpack.c.l.b16 %v3273_v59 }
 0x110   : > { %v1431_v47 = vadd.f32 %v1430_v22, %v1382_v2  ;;  %2562 = vmatmul.bf16.gmra.mxu1 %v2486_v34  ;;  %v1654_v22 = vrot.slane %v1652_v5, 1  ;;  %v1662_v53 = vshrl.u32 %v4765_v38, 16 }
 0x112   : > { %2040 = vmatmul.bf16.gmra.mxu3 %v1648_v8  ;;  %v4754_v46 = vadd.f32 %v1479_v51, %v1431_v47  ;;  %v1191_v21 = vpop.f32.mrf.mxu2  ;;  %v2332_v51 = vsel %vm4704_vm4, %v2327_v14, %v2331_v17  ;;  %v1655_v42 = vor.u32 %v1654_v22, %v1650_v0  ;;  %v2340_v14 = vor.u32 %v2339_v29, %v2336_v54  ;;  %v3442_v22 = vld [vmem:[%s4241_s13 + $0x3c] sm:$0xf]  ;;  %v3274_v54 = vld [vmem:[%s4241_s13 + $0x50] sm:$0x1] }
 0x113   : > { %v1192_v26 = vadd.f32 %v1191_v21, %v4639_v35  ;;  %v2347_v35 = vshrl.u32 %v3440_v28, 16  ;;  %v2474_v40 = vunpack.c.l.b16 %v2332_v51  ;;  %v1620_v0 = vpack.c.b16 %v1612_v13, %v1612_v13 }
 0x114   : > { %v1435_v32 = vpop.f32.mrf.mxu0  ;;  %v1660_v5 = vsel %vm408_vm0, %v1655_v42, %v1659_v45  ;;  %v2341_v28 = vrot.slane %v2340_v14, 4  ;;  %v2367_v42 = vshll.u32 %v3443_v55, 16  ;;  %v1613_v13 = vunpack.c.l.b16 %v3274_v54  ;;  %v4816_v54 = vld [vmem:[%s4241_s13 + $0x54] sm:$0xff]  }
 0x115   : > { %v1384_v4 = vpop.f32.mrf.mxu3  ;;  %v1484_v37 = vpop.f32.mrf.mxu1  ;;  %v2349_v34 = vrot.slane %v2347_v35, 4  ;;  %v2487_v47 = vpack.c.b16 %v2474_v40, %v2473_v52  ;;  %v1669_v48 = vshll.u32 %v1620_v0, 16 }
 0x116   : > { %v1385_v36 = vadd.f32 %v1384_v4, %v1192_v26  ;;  %v2355_v4 = vrot.slane %v2353_v19, 5  ;;  %v2346_v44 = vsel %vm4704_vm4, %v2341_v28, %v2345_v20  ;;  %v2369_v60 = vrot.slane %v2367_v42, 5 }
 0x117   : > { %v2350_v17 = vor.u32 %v2349_v34, %v2345_v20  ;;  %v2475_v34 = vunpack.c.l.b16 %v2346_v44 }
 0x118   : > { %v1434_v49 = vadd.f32 %v1433_v62, %v1385_v36  ;;  %v2361_v36 = vshll.u32 %v3442_v22, 16 }
 0x119   : > { %v2351_v26 = vrot.slane %v2350_v17, 4 }
 0x11a   : > { %v4770_v11 = vadd.f32 %v1482_v3, %v1434_v49  ;;  %v1193_v1 = vpop.f32.mrf.mxu2  ;;  %v2363_v29 = vrot.slane %v2361_v36, 5  ;;  %v3445_v36 = vld [vmem:[%s4241_s13 + $0x48] sm:$0xf] }
 0x11b   : > { %v1194_v2 = vadd.f32 %v1193_v1, %v4657_v50  ;;  %v1664_v50 = vshll.u32 %v4765_v38, 16 }
 0x11c   : > { %v1438_v62 = vpop.f32.mrf.mxu0 }
 0x11d   : > { %v1386_v8 = vpop.f32.mrf.mxu3  ;;  %v1487_v16 = vpop.f32.mrf.mxu1  ;;  %v1666_v35 = vrot.slane %v1664_v50, 1 }
 0x11e   : > { %v1387_v3 = vadd.f32 %v1386_v8, %v1194_v2 }
 0x11f   : > { %1996 = vmatmul.bf16.gmra.mxu2 %v4746_v58  ;;  %2094 = vmatmul.bf16.gmra.mxu0 %v1761_v33  ;;  %v2358_v58 = vshrl.u32 %v3442_v22, 16  ;;  %v1671_v33 = vrot.slane %v1669_v48, 1 }
 0x120   : > { %v1436_v21 = vadd.f32 %v1435_v32, %v1387_v3  ;;  %2567 = vmatmul.bf16.gmra.mxu1 %v2487_v47  ;;  %v3910_v32 = vor.u32 %v3909_v15, %v4768_v39  ;;  %v1763_v39 = vrot.slane %v1620_v0, 1  ;;  %v3444_v47 = vld [vmem:[%s4241_s13 + $0x44] sm:$0x1] }
 0x121   : > { %v2360_v59 = vrot.slane %v2358_v58, 4 }
 0x122   : > { %2045 = vmatmul.bf16.gmra.mxu3 %v1660_v5  ;;  %v4781_v23 = vadd.f32 %v1484_v37, %v1436_v21  ;;  %v1196_v57 = vpop.f32.mrf.mxu2  ;;  %v2371_v37 = vshrl.u32 %v3443_v55, 16  ;;  %v1762_v40 = vrot.slane %v3910_v32, 1  ;;  %v1667_v5 = vor.u32 %v1666_v35, %v1662_v53 }
 0x123   : > { %v1197_v51 = vadd.f32 %v1196_v57, %v4673_v6  ;;  %v2356_v6 = vsel %vm4704_vm4, %v2351_v26, %v2355_v4  ;;  %v2364_v14 = vor.u32 %v2363_v29, %v2360_v59  ;;  %v3756_v57 = vld [vmem:[%s4241_s13 + $0x48] sm:$0xf0]  ;;  %v4819_v59 = vld [vmem:[%s4241_s13 + $0x54] sm:$0xf0]  ;;  %v2385_v29 = vshll.u32 %v3445_v36, 16 }
 0x124   : > { %v1440_v41 = vpop.f32.mrf.mxu0  ;;  %v2476_v1 = vunpack.c.l.b16 %v2356_v6  ;;  %v2373_v2 = vrot.slane %v2371_v37, 4  ;;  %v1764_v19 = vsel %vm537_vm1, %v1762_v40, %v1763_v39  ;;  %v1672_v28 = vsel %vm408_vm0, %v1667_v5, %v1671_v33  ;;  %v3446_v37 = vld [vmem:[%s4241_s13 + $0x4c] sm:$0xf] }
 0x125   : > { %v1389_v27 = vpop.f32.mrf.mxu3  ;;  %v1489_v49 = vpop.f32.mrf.mxu1  ;;  %v2365_v55 = vrot.slane %v2364_v14, 4  ;;  %v2382_v39 = vshrl.u32 %v3445_v36, 16  ;;  %v2387_v14 = vrot.slane %v2385_v29, 5 }
 0x126   : > { %v1390_v45 = vadd.f32 %v1389_v27, %v1197_v51  ;;  %v2488_v21 = vpack.c.b16 %v2476_v1, %v2475_v34  ;;  %v2374_v50 = vor.u32 %v2373_v2, %v2369_v60  ;;  %v3757_v51 = vld [vmem:[%s4241_s13 + $0x48] sm:$0xe]  ;;  %v2391_v34 = vshll.u32 %v3446_v37, 16 }
 0x127   : > { %v3758_v48 = vor.u32 %v3757_v51, %v3756_v57  ;;  %v2370_v6 = vsel %vm4704_vm4, %v2365_v55, %v2369_v60  ;;  %v3912_v57 = vld [vmem:[%s4241_s13 + $0x54] sm:$0xe] }
 0x128   : > { %v1439_v52 = vadd.f32 %v1438_v62, %v1390_v45  ;;  %v4797_v62 = vld [vmem:[%s4241_s13 + $0x48] sm:$0xff]   ;;  %v2375_v27 = vrot.slane %v2374_v50, 4 }
 0x129   : > { %v1676_v26 = vshll.u32 %v4797_v62, 16  ;;  %v1674_v35 = vshrl.u32 %v4797_v62, 16  ;;  %v1765_v33 = vrot.slane %v3758_v48, 1  ;;  %v3449_v48 = vld [vmem:[%s4241_s13 + $0x58] sm:$0xf] }
 0x12a   : > { %v4792_v8 = vadd.f32 %v1487_v16, %v1439_v52  ;;  %v1198_v20 = vpop.f32.mrf.mxu2  ;;  %v2377_v16 = vshll.u32 %v3444_v47, 16  ;;  %v2477_v47 = vunpack.c.l.b16 %v2370_v6 }
 0x12b   : > { %v1199_v15 = vadd.f32 %v1198_v20, %v4685_v30  ;;  %v1621_v30 = vpack.c.b16 %v1613_v13, %v1613_v13  ;;  %v2384_v13 = vrot.slane %v2382_v39, 4 }
 0x12c   : > { %v1443_v17 = vpop.f32.mrf.mxu0  ;;  %v2379_v32 = vrot.slane %v2377_v16, 5  ;;  %v3447_v16 = vld [vmem:[%s4241_s13 + $0x50] sm:$0x1] }
 0x12d   : > { %v1391_v3 = vpop.f32.mrf.mxu3  ;;  %v1492_v22 = vpop.f32.mrf.mxu1  ;;  %v1681_v42 = vshll.u32 %v1621_v30, 16  ;;  %v1766_v60 = vrot.slane %v1621_v30, 1  ;;  %v2401_v36 = vshll.u32 %v3447_v16, 16 }
 0x12e   : > { %v1392_v0 = vadd.f32 %v1391_v3, %v1199_v15  ;;  %v3275_v3 = vld [vmem:[%s4241_s13 + $0x5c] sm:$0x1] }
 0x12f   : > { %2001 = vmatmul.bf16.gmra.mxu2 %v4765_v38  ;;  %2099 = vmatmul.bf16.gmra.mxu0 %v1764_v19  ;;  %v1683_v2 = vrot.slane %v1681_v42, 1  ;;  %v2393_v19 = vrot.slane %v2391_v34, 5  ;;  %v1767_v30 = vsel %vm537_vm1, %v1765_v33, %v1766_v60  ;;  %v1614_v55 = vunpack.c.l.b16 %v3275_v3 }
 0x130   : > { %v1441_v4 = vadd.f32 %v1440_v41, %v1392_v0  ;;  %2572 = vmatmul.bf16.gmra.mxu1 %v2488_v21  ;;  %v1678_v41 = vrot.slane %v1676_v26, 1  ;;  %v1686_v34 = vshrl.u32 %v4816_v54, 16 }
 0x132   : > { %2050 = vmatmul.bf16.gmra.mxu3 %v1672_v28  ;;  %v4805_v58 = vadd.f32 %v1489_v49, %v1441_v4  ;;  %v1201_v53 = vpop.f32.mrf.mxu2  ;;  %v2380_v49 = vsel %vm4704_vm4, %v2375_v27, %v2379_v32  ;;  %v1679_v1 = vor.u32 %v1678_v41, %v1674_v35  ;;  %v2388_v27 = vor.u32 %v2387_v14, %v2384_v13  ;;  %v3448_v41 = vld [vmem:[%s4241_s13 + $0x54] sm:$0xf]  ;;  %v3276_v13 = vld [vmem:[%s4241_s13 + $0x68] sm:$0x1] }
 0x133   : > { %v1202_v38 = vadd.f32 %v1201_v53, %v4698_v61  ;;  %v2395_v61 = vshrl.u32 %v3446_v37, 16  ;;  %v2478_v20 = vunpack.c.l.b16 %v2380_v49  ;;  %v1622_v35 = vpack.c.b16 %v1614_v55, %v1614_v55 }
 0x134   : > { %v1445_v44 = vpop.f32.mrf.mxu0  ;;  %v1684_v26 = vsel %vm408_vm0, %v1679_v1, %v1683_v2  ;;  %v2389_v37 = vrot.slane %v2388_v27, 4  ;;  %v2415_v1 = vshll.u32 %v3449_v48, 16  ;;  %v1615_v55 = vunpack.c.l.b16 %v3276_v13  ;;  %v4867_v13 = vld [vmem:[%s4241_s13 + $0x6c] sm:$0xff]  }
 0x135   : > { %v1394_v45 = vpop.f32.mrf.mxu3  ;;  %v1494_v40 = vpop.f32.mrf.mxu1  ;;  %v2397_v21 = vrot.slane %v2395_v61, 4  ;;  %v2489_v4 = vpack.c.b16 %v2478_v20, %v2477_v47  ;;  %v1693_v33 = vshll.u32 %v1622_v35, 16 }
 0x136   : > { %v1395_v52 = vadd.f32 %v1394_v45, %v1202_v38  ;;  %v2403_v45 = vrot.slane %v2401_v36, 5  ;;  %v2394_v60 = vsel %vm4704_vm4, %v2389_v37, %v2393_v19  ;;  %v2417_v16 = vrot.slane %v2415_v1, 5 }
 0x137   : > { %v2398_v32 = vor.u32 %v2397_v21, %v2393_v19  ;;  %v2479_v21 = vunpack.c.l.b16 %v2394_v60 }
 0x138   : > { %v1444_v5 = vadd.f32 %v1443_v17, %v1395_v52  ;;  %v2409_v52 = vshll.u32 %v3448_v41, 16 }
 0x139   : > { %v2399_v38 = vrot.slane %v2398_v32, 4 }
 0x13a   : > { %v4821_v15 = vadd.f32 %v1492_v22, %v1444_v5  ;;  %v1203_v50 = vpop.f32.mrf.mxu2  ;;  %v2411_v14 = vrot.slane %v2409_v52, 5  ;;  %v3451_v52 = vld [vmem:[%s4241_s13 + $0x60] sm:$0xf] }
 0x13b   : > { %v1204_v0 = vadd.f32 %v1203_v50, %v4721_v31  ;;  %v1688_v31 = vshll.u32 %v4816_v54, 16 }
 0x13c   : > { %v1448_v17 = vpop.f32.mrf.mxu0 }
 0x13d   : > { %v1396_v28 = vpop.f32.mrf.mxu3  ;;  %v1497_v51 = vpop.f32.mrf.mxu1  ;;  %v1690_v61 = vrot.slane %v1688_v31, 1 }
 0x13e   : > { %v1397_v22 = vadd.f32 %v1396_v28, %v1204_v0 }
 0x13f   : > { %2006 = vmatmul.bf16.gmra.mxu2 %v4797_v62  ;;  %2104 = vmatmul.bf16.gmra.mxu0 %v1767_v30  ;;  %v2406_v62 = vshrl.u32 %v3448_v41, 16  ;;  %v1695_v30 = vrot.slane %v1693_v33, 1 }
 0x140   : > { %v1446_v53 = vadd.f32 %v1445_v44, %v1397_v22  ;;  %2577 = vmatmul.bf16.gmra.mxu1 %v2489_v4  ;;  %v3913_v44 = vor.u32 %v3912_v57, %v4819_v59  ;;  %v1769_v59 = vrot.slane %v1622_v35, 1  ;;  %v3450_v4 = vld [vmem:[%s4241_s13 + $0x5c] sm:$0x1] }
 0x141   : > { %v2408_v3 = vrot.slane %v2406_v62, 4 }
 0x142   : > { %2055 = vmatmul.bf16.gmra.mxu3 %v1684_v26  ;;  %v4832_v42 = vadd.f32 %v1494_v40, %v1446_v53  ;;  %v1206_v6 = vpop.f32.mrf.mxu2  ;;  %v2419_v40 = vshrl.u32 %v3449_v48, 16  ;;  %v1768_v20 = vrot.slane %v3913_v44, 1  ;;  %v1691_v26 = vor.u32 %v1690_v61, %v1686_v34 }
 0x143   : > { %v1207_v49 = vadd.f32 %v1206_v6, %v4620_v12  ;;  %v2404_v12 = vsel %vm4704_vm4, %v2399_v38, %v2403_v45  ;;  %v2412_v27 = vor.u32 %v2411_v14, %v2408_v3  ;;  %v3759_v6 = vld [vmem:[%s4241_s13 + $0x60] sm:$0xf0]  ;;  %v3914_v3 = vld [vmem:[%s4241_s13 + $0x6c] sm:$0xf0]  ;;  %v2433_v14 = vshll.u32 %v3451_v52, 16 }
 0x144   : > { %v1450_v29 = vpop.f32.mrf.mxu0  ;;  %v2480_v50 = vunpack.c.l.b16 %v2404_v12  ;;  %v2421_v0 = vrot.slane %v2419_v40, 4  ;;  %v1770_v36 = vsel %vm537_vm1, %v1768_v20, %v1769_v59  ;;  %v1696_v37 = vsel %vm408_vm0, %v1691_v26, %v1695_v30  ;;  %v3452_v40 = vld [vmem:[%s4241_s13 + $0x64] sm:$0xf] }
 0x145   : > { %v1399_v39 = vpop.f32.mrf.mxu3  ;;  %v1499_v5 = vpop.f32.mrf.mxu1  ;;  %v2413_v48 = vrot.slane %v2412_v27, 4  ;;  %v2430_v59 = vshrl.u32 %v3451_v52, 16  ;;  %v2435_v27 = vrot.slane %v2433_v14, 5 }
 0x146   : > { %v1400_v2 = vadd.f32 %v1399_v39, %v1207_v49  ;;  %v2490_v53 = vpack.c.b16 %v2480_v50, %v2479_v21  ;;  %v2422_v31 = vor.u32 %v2421_v0, %v2417_v16  ;;  %v3760_v49 = vld [vmem:[%s4241_s13 + $0x60] sm:$0xe]  ;;  %v2439_v21 = vshll.u32 %v3452_v40, 16 }
 0x147   : > { %v3761_v33 = vor.u32 %v3760_v49, %v3759_v6  ;;  %v2418_v12 = vsel %vm4704_vm4, %v2413_v48, %v2417_v16  ;;  %v3915_v49 = vld [vmem:[%s4241_s13 + $0x6c] sm:$0xe] }
 0x148   : > { %v1449_v47 = vadd.f32 %v1448_v17, %v1400_v2  ;;  %v4848_v17 = vld [vmem:[%s4241_s13 + $0x60] sm:$0xff]   ;;  %v2423_v39 = vrot.slane %v2422_v31, 4  ;;  %v2481_v16 = vunpack.c.l.b16 %v2418_v12 }
 0x149   : > { %v1700_v38 = vshll.u32 %v4848_v17, 16  ;;  %v1698_v61 = vshrl.u32 %v4848_v17, 16  ;;  %v1771_v30 = vrot.slane %v3761_v33, 1 }
 0x14a   : > { %v4843_v28 = vadd.f32 %v1497_v51, %v1449_v47  ;;  %v1208_v19 = vpop.f32.mrf.mxu2  ;;  %v2425_v51 = vshll.u32 %v3450_v4, 16 }
 0x14b   : > { %v1209_v57 = vadd.f32 %v1208_v19, %v4630_v25  ;;  %v1623_v25 = vpack.c.b16 %v1615_v55, %v1615_v55  ;;  %v2432_v55 = vrot.slane %v2430_v59, 4 }
 0x14c   : > { %v1453_v32 = vpop.f32.mrf.mxu0  ;;  %v2427_v44 = vrot.slane %v2425_v51, 5  ;;  %v3453_v51 = vld [vmem:[%s4241_s13 + $0x68] sm:$0x1] }
 0x14d   : > { %v1401_v22 = vpop.f32.mrf.mxu3  ;;  %v1502_v41 = vpop.f32.mrf.mxu1  ;;  %v1705_v1 = vshll.u32 %v1623_v25, 16  ;;  %v1772_v4 = vrot.slane %v1623_v25, 1  ;;  %v2449_v52 = vshll.u32 %v3453_v51, 16 }
 0x14e   : > { %v1402_v35 = vadd.f32 %v1401_v22, %v1209_v57  ;;  %v3277_v22 = vld [vmem:[%s4241_s13 + $0x74] sm:$0x1]  ;;  %s4901_s13 = sand.u32 1, %s4079_s22  }
 0x14f   : > { %2011 = vmatmul.bf16.gmra.mxu2 %v4816_v54  ;;  %2109 = vmatmul.bf16.gmra.mxu0 %v1770_v36  ;;  %v1707_v0 = vrot.slane %v1705_v1, 1  ;;  %v2441_v36 = vrot.slane %v2439_v21, 5  ;;  %v1773_v25 = vsel %vm537_vm1, %v1771_v30, %v1772_v4  ;;  %v1616_v48 = vunpack.c.l.b16 %v3277_v22  ;;  %s2970_s16 = sshll.u32 %s4901_s13, 6 }
 0x150   : > { %v1451_v45 = vadd.f32 %v1450_v29, %v1402_v35  ;;  %2582 = vmatmul.bf16.gmra.mxu1 %v2490_v53  ;;  %v1702_v29 = vrot.slane %v1700_v38, 1  ;;  %s4906_s17 = scalar_lea.vmem [#allocation4], %s2970_s16  ;;  %s4911_s18 = scalar_lea.vmem [#allocation2], %s2970_s16 }
 0x151   : > { %s4991_s16 = sand.u32 1, %s5148_s14   ;;  %s2741_s19 = sshll.u32 %s4906_s17, 4  ;;  %s2742_s19 = int_to_ptr.vmem [resolvable:$true] %s2741_s19 }
 0x152   : > { %2060 = vmatmul.bf16.gmra.mxu3 %v1696_v37  ;;  %v4856_v62 = vadd.f32 %v1499_v5, %v1451_v45  ;;  %v1211_v34 = vpop.f32.mrf.mxu2  ;;  %v2428_v5 = vsel %vm4704_vm4, %v2423_v39, %v2427_v44  ;;  %v1703_v50 = vor.u32 %v1702_v29, %v1698_v61  ;;  %v2436_v39 = vor.u32 %v2435_v27, %v2432_v55  ;;  %s5133_s12 = scalar_lea.sflag [#allocation5], %s4991_s16  ;;  %s3931_s14 = sshra.s32 %s2744_s20, 4  ;;  %s3932_s14 = int_to_ptr.hbm [resolvable:$true] %s3931_s14 }
 0x153   : > { %v1212_v54 = vadd.f32 %v1211_v34, %v4650_v43  ;;  %v2443_v43 = vshrl.u32 %v3452_v40, 16  ;;  %v2482_v19 = vunpack.c.l.b16 %v2428_v5  ;;  %v1624_v61 = vpack.c.b16 %v1616_v48, %v1616_v48  ;;  %s3933_s29 = scalar_lea.hbm %s3932_s14, 64  ;;  %p3938_p2 = scmp.lt.s32.totalorder %s3932_s14, %s5125_s4 }
 0x154   : > { %v1455_v60 = vpop.f32.mrf.mxu0  ;;  %v1708_v38 = vsel %vm408_vm0, %v1703_v50, %v1707_v0  ;;  %v2437_v1 = vrot.slane %v2436_v39, 4  ;;  %p3934_p13 = scmp.ne.s32.totalorder %s3932_s14, %s3933_s29  ;;  %p3939_p4 = scmp.lt.s32.totalorder %s3937_s1, %s3933_s29 }
 0x155   : > { %v1404_v2 = vpop.f32.mrf.mxu3  ;;  %v1504_v20 = vpop.f32.mrf.mxu1  ;;  %v2445_v53 = vrot.slane %v2443_v43, 4  ;;  %v2491_v45 = vpack.c.b16 %v2482_v19, %v2481_v16  ;;  %v1717_v21 = vshll.u32 %v1624_v61, 16 }
 0x156   : > { %v1405_v47 = vadd.f32 %v1404_v2, %v1212_v54  ;;  %v2451_v54 = vrot.slane %v2449_v52, 5  ;;  %v2442_v43 = vsel %vm4704_vm4, %v2437_v1, %v2441_v36  ;;  %p3935_p0 = pnand %p3934_p13, %p4195_p3  ;;  %p3940_p5 = por %p3939_p4, %p3938_p2 }
 0x157   : > { %v2446_v44 = vor.u32 %v2445_v53, %v2441_v36  ;;  %v2483_v30 = vunpack.c.l.b16 %v2442_v43  ;;  %v1719_v19 = vrot.slane %v1717_v21, 1 }
 0x158   : > { %v1454_v26 = vadd.f32 %v1453_v32, %v1405_v47  ;;  %p3936_p1 = pneg %p3935_p0 }
 0x159   : > { %v2447_v40 = vrot.slane %v2446_v44, 4 }
 0x15a   : > { %v4870_v57 = vadd.f32 %v1502_v41, %v1454_v26  ;;  %v1213_v31 = vpop.f32.mrf.mxu2  ;;  %v1775_v26 = vrot.slane %v1624_v61, 1  ;;  %p3941_p6 = pnand %p3940_p5, %p3936_p1 }
 0x15b   : > { %v1214_v35 = vadd.f32 %v1213_v31, %v4667_v7  ;;  %v1712_v7 = vshll.u32 %v4867_v13, 16 }
 0x15c   : > { %v1458_v32 = vpop.f32.mrf.mxu0 }
 0x15d   : > { %v1406_v37 = vpop.f32.mrf.mxu3  ;;  %v1507_v41 = vpop.f32.mrf.mxu1  ;;  %v1714_v59 = vrot.slane %v1712_v7, 1 }
 0x15e   : > { %v1407_v6 = vadd.f32 %v1406_v37, %v1214_v35 }
 0x15f   : > { %2016 = vmatmul.bf16.gmra.mxu2 %v4848_v17  ;;  %2114 = vmatmul.bf16.gmra.mxu0 %v1773_v25  ;;  %v3916_v17 = vor.u32 %v3915_v49, %v3914_v3 }
 0x160   : > { %v1456_v34 = vadd.f32 %v1455_v60, %v1407_v6  ;;  %2587 = vmatmul.bf16.gmra.mxu1 %v2491_v45  ;;  %v1710_v60 = vshrl.u32 %v4867_v13, 16 }
 0x161   : > { %v1774_v0 = vrot.slane %v3916_v17, 1 }
 0x162   : > { %2065 = vmatmul.bf16.gmra.mxu3 %v1708_v38  ;;  %v4880_v29 = vadd.f32 %v1504_v20, %v1456_v34  ;;  %v1216_v2 = vpop.f32.mrf.mxu2  ;;  %v2452_v20 = vsel %vm4704_vm4, %v2447_v40, %v2451_v54  ;;  %v1715_v16 = vor.u32 %v1714_v59, %v1710_v60 }
 0x163   : > { %v1217_v33 = vadd.f32 %v1216_v2, %v4683_v24  ;;  %v2484_v24 = vunpack.c.l.b16 %v2452_v20  ;;  %v1776_v53 = vsel %vm537_vm1, %v1774_v0, %v1775_v26 }
 0x164   : > { %v1460_v5 = vpop.f32.mrf.mxu0  ;;  %v1720_v51 = vsel %vm408_vm0, %v1715_v16, %v1719_v19 }
 0x165   : > { %v1409_v12 = vpop.f32.mrf.mxu3  ;;  %v1509_v14 = vpop.f32.mrf.mxu1  ;;  %v2492_v36 = vpack.c.b16 %v2484_v24, %v2483_v30 }
 0x166   : > { %v1410_v47 = vadd.f32 %v1409_v12, %v1217_v33 }
 0x168   : > { %v1459_v50 = vadd.f32 %v1458_v32, %v1410_v47 }
 0x16a   : > { %v4888_v4 = vadd.f32 %v1507_v41, %v1459_v50  ;;  %v1218_v55 = vpop.f32.mrf.mxu2 }
 0x16b   : > { %v1219_v3 = vadd.f32 %v1218_v55, %v4692_v10 }
 0x16c   : > { %v1463_v27 = vpop.f32.mrf.mxu0 }
 0x16d   : > { %v1411_v22 = vpop.f32.mrf.mxu3  ;;  %v1512_v63 = vpop.f32.mrf.mxu1 }
 0x16e   : > { %v1412_v31 = vadd.f32 %v1411_v22, %v1219_v3 }
 0x16f   : > { %2021 = vmatmul.bf16.gmra.mxu2 %v4867_v13  ;;  %2119 = vmatmul.bf16.gmra.mxu0 %v1776_v53 }
 0x170   : > { %v1461_v35 = vadd.f32 %v1460_v5, %v1412_v31  ;;  %2592 = vmatmul.bf16.gmra.mxu1 %v2492_v36 }
 0x172   : > { %2070 = vmatmul.bf16.gmra.mxu3 %v1720_v51  ;;  %v4894_v37 = vadd.f32 %v1509_v14, %v1461_v35  ;;  %v1221_v38 = vpop.f32.mrf.mxu2 }
 0x173   : > { %v1222_v10 = vadd.f32 %v1221_v38, %v4711_v18 }
 0x174   : > { %v1465_v25 = vpop.f32.mrf.mxu0 }
 0x175   : > { %v1414_v32 = vpop.f32.mrf.mxu3  ;;  %v1514_v48 = vpop.f32.mrf.mxu1 }
 0x176   : > { %v1415_v45 = vadd.f32 %v1414_v32, %v1222_v10 }
 0x178   : > { %v1464_v6 = vadd.f32 %v1463_v27, %v1415_v45 }
 0x17a   : > { %v4897_v41 = vadd.f32 %v1512_v63, %v1464_v6  ;;  %v1223_v49 = vpop.f32.mrf.mxu2 }
 0x17b   : > { %v1224_v39 = vadd.f32 %v1223_v49, %v4727_v56 }
 0x17c   : > { %v2085_v44 = vpop.f32.mrf.mxu0 }
 0x17d   : > { %v1416_v13 = vpop.f32.mrf.mxu3  ;;  %v2558_v34 = vpop.f32.mrf.mxu1 }
 0x17e   : > { %v1417_v52 = vadd.f32 %v1416_v13, %v1224_v39  ;;  %v2651_v40 = vmul.f32 %v2558_v34, %v2558_v34 }
 0x180   : > { %v1466_v7 = vadd.f32 %v1465_v25, %v1417_v52 }
 0x182   : > { %v4903_v61 = vadd.f32 %v1514_v48, %v1466_v7  ;;  %v1987_v18 = vpop.f32.mrf.mxu2 }
 0x184   : > { %v2087_v54 = vpop.f32.mrf.mxu0 }
 0x185   : > { %v2036_v1 = vpop.f32.mrf.mxu3  ;;  %v2560_v2 = vpop.f32.mrf.mxu1 }
 0x186   : > { %v2037_v33 = vadd.f32 %v2036_v1, %v1987_v18  ;;  %v3678_v12 = vpack.c.bf16 %v2560_v2, %v2558_v34  ;;  %v2630_v5 = vadd.f32 %v2560_v2, %v2558_v34  ;;  %v2652_v56 = vmul.f32 %v2560_v2, %v2560_v2 }
 0x188   : > { %3679 = vst [vmem:[%s4906_s17] sm:$0xff] %v3678_v12   ;;  %v2667_v60 = vadd.f32 %v2652_v56, %v2651_v40  ;;  %v2086_v59 = vadd.f32 %v2085_v44, %v2037_v33 }
 0x18a   : > { %v1989_v17 = vpop.f32.mrf.mxu2  ;;  %v2125_v20 = vadd.f32 %v2086_v59, %v4741_v9 }
 0x18c   : > { %v2090_v21 = vpop.f32.mrf.mxu0  ;;  %v2194_v16 = vmul.f32 %v2125_v20, %v2125_v20 }
 0x18d   : > { %v2038_v47 = vpop.f32.mrf.mxu3  ;;  %v2563_v43 = vpop.f32.mrf.mxu1 }
 0x18e   : > { %v2039_v14 = vadd.f32 %v2038_v47, %v1989_v17  ;;  %v2631_v0 = vadd.f32 %v2630_v5, %v2563_v43  ;;  %v2653_v26 = vmul.f32 %v2563_v43, %v2563_v43 }
 0x190   : > { %v2088_v50 = vadd.f32 %v2087_v54, %v2039_v14  ;;  %v2668_v24 = vadd.f32 %v2667_v60, %v2653_v26 }
 0x192   : > { %v2126_v30 = vadd.f32 %v2088_v50, %v4754_v46  ;;  %v1992_v22 = vpop.f32.mrf.mxu2 }
 0x194   : > { %v3638_v19 = vpack.c.bf16 %v2126_v30, %v2125_v20  ;;  %v2173_v55 = vadd.f32 %v2126_v30, %v2125_v20  ;;  %v2195_v3 = vmul.f32 %v2126_v30, %v2126_v30  ;;  %v2092_v9 = vpop.f32.mrf.mxu0 }
 0x195   : > { %v2041_v27 = vpop.f32.mrf.mxu3  ;;  %v2565_v31 = vpop.f32.mrf.mxu1 }
 0x196   : > { %3639 = vst [vmem:[%s4911_s18] sm:$0xff] %v3638_v19   ;;  %v2210_v53 = vadd.f32 %v2195_v3, %v2194_v16  ;;  %v2042_v36 = vadd.f32 %v2041_v27, %v1992_v22  ;;  %v3683_v51 = vpack.c.bf16 %v2565_v31, %v2563_v43  ;;  %v2632_v35 = vadd.f32 %v2631_v0, %v2565_v31 }
 0x197   : > { %v2654_v46 = vmul.f32 %v2565_v31, %v2565_v31 }
 0x198   : > { %v2091_v63 = vadd.f32 %v2090_v21, %v2042_v36  ;;  %3769 = vst [vmem:[%s4906_s17 + $0x8] sm:$0xff] %v3683_v51  }
 0x199   : > { %v2669_v10 = vadd.f32 %v2668_v24, %v2654_v46 }
 0x19a   : > { %v2127_v38 = vadd.f32 %v2091_v63, %v4770_v11  ;;  %v1994_v45 = vpop.f32.mrf.mxu2 }
 0x19c   : > { %v2174_v32 = vadd.f32 %v2173_v55, %v2127_v38  ;;  %v2196_v25 = vmul.f32 %v2127_v38, %v2127_v38  ;;  %v2095_v39 = vpop.f32.mrf.mxu0 }
 0x19d   : > { %v2043_v48 = vpop.f32.mrf.mxu3  ;;  %v2568_v13 = vpop.f32.mrf.mxu1 }
 0x19e   : > { %v2211_v6 = vadd.f32 %v2210_v53, %v2196_v25  ;;  %v2044_v49 = vadd.f32 %v2043_v48, %v1994_v45  ;;  %v4916_v52 = vadd.f32 %v2632_v35, %v2568_v13  ;;  %v2655_v34 = vmul.f32 %v2568_v13, %v2568_v13 }
 0x1a0   : > { %v2093_v44 = vadd.f32 %v2092_v9, %v2044_v49  ;;  %v4919_v18 = vadd.f32 %v2669_v10, %v2655_v34 }
 0x1a2   : > { %v2128_v7 = vadd.f32 %v2093_v44, %v4781_v23  ;;  %v1997_v54 = vpop.f32.mrf.mxu2 }
 0x1a4   : > { %v3643_v11 = vpack.c.bf16 %v2128_v7, %v2127_v38  ;;  %v2175_v1 = vadd.f32 %v2174_v32, %v2128_v7  ;;  %v2197_v40 = vmul.f32 %v2128_v7, %v2128_v7  ;;  %v2097_v5 = vpop.f32.mrf.mxu0 }
 0x1a5   : > { %v2046_v2 = vpop.f32.mrf.mxu3  ;;  %v4922_v56 = vpop.f32.mrf.mxu1 }
 0x1a6   : > { %3762 = vst [vmem:[%s4911_s18 + $0x8] sm:$0xff] %v3643_v11   ;;  %v2212_v33 = vadd.f32 %v2211_v6, %v2197_v40  ;;  %v2047_v12 = vadd.f32 %v2046_v2, %v1997_v54  ;;  %v3688_v59 = vpack.c.bf16 %v4922_v56, %v2568_v13 }
 0x1a8   : > { %v2096_v60 = vadd.f32 %v2095_v39, %v2047_v12  ;;  %3770 = vst [vmem:[%s4906_s17 + $0x10] sm:$0xff] %v3688_v59  }
 0x1aa   : > { %v2129_v17 = vadd.f32 %v2096_v60, %v4792_v8  ;;  %v1999_v14 = vpop.f32.mrf.mxu2 }
 0x1ac   : > { %v2176_v23 = vadd.f32 %v2175_v1, %v2129_v17  ;;  %v2198_v47 = vmul.f32 %v2129_v17, %v2129_v17  ;;  %v2100_v50 = vpop.f32.mrf.mxu0 }
 0x1ad   : > { %v2048_v21 = vpop.f32.mrf.mxu3  ;;  %v4927_v0 = vpop.f32.mrf.mxu1 }
 0x1ae   : > { %v2213_v43 = vadd.f32 %v2212_v33, %v2198_v47  ;;  %v2049_v20 = vadd.f32 %v2048_v21, %v1999_v14 }
 0x1b0   : > { %v2098_v26 = vadd.f32 %v2097_v5, %v2049_v20 }
 0x1b2   : > { %v2130_v30 = vadd.f32 %v2098_v26, %v4805_v58  ;;  %v2002_v55 = vpop.f32.mrf.mxu2 }
 0x1b4   : > { %v3648_v24 = vpack.c.bf16 %v2130_v30, %v2129_v17  ;;  %v2177_v16 = vadd.f32 %v2176_v23, %v2130_v30  ;;  %v2199_v19 = vmul.f32 %v2130_v30, %v2130_v30  ;;  %v2102_v27 = vpop.f32.mrf.mxu0 }
 0x1b5   : > { %v2051_v8 = vpop.f32.mrf.mxu3  ;;  %v4931_v53 = vpop.f32.mrf.mxu1 }
 0x1b6   : > { %3763 = vst [vmem:[%s4911_s18 + $0x10] sm:$0xff] %v3648_v24   ;;  %v2214_v3 = vadd.f32 %v2213_v43, %v2199_v19  ;;  %v2052_v22 = vadd.f32 %v2051_v8, %v2002_v55  ;;  %v3693_v9 = vpack.c.bf16 %v4931_v53, %v4927_v0 }
 0x1b8   : > { %v2101_v36 = vadd.f32 %v2100_v50, %v2052_v22  ;;  %3771 = vst [vmem:[%s4906_s17 + $0x18] sm:$0xff] %v3693_v9  }
 0x1ba   : > { %v2131_v31 = vadd.f32 %v2101_v36, %v4821_v15  ;;  %v2004_v51 = vpop.f32.mrf.mxu2 }
 0x1bc   : > { %v2178_v58 = vadd.f32 %v2177_v16, %v2131_v31  ;;  %v2200_v63 = vmul.f32 %v2131_v31, %v2131_v31  ;;  %v2105_v10 = vpop.f32.mrf.mxu0 }
 0x1bd   : > { %v2053_v35 = vpop.f32.mrf.mxu3  ;;  %v4937_v32 = vpop.f32.mrf.mxu1 }
 0x1be   : > { %v2215_v46 = vadd.f32 %v2214_v3, %v2200_v63  ;;  %v2054_v38 = vadd.f32 %v2053_v35, %v2004_v51  ;;  %v2657_v51 = vmul.f32 %v4927_v0, %v4927_v0 }
 0x1c0   : > { %v2103_v25 = vadd.f32 %v2102_v27, %v2054_v38 }
 0x1c2   : > { %v2132_v45 = vadd.f32 %v2103_v25, %v4832_v42  ;;  %v2007_v39 = vpop.f32.mrf.mxu2 }
 0x1c4   : > { %v3653_v48 = vpack.c.bf16 %v2132_v45, %v2131_v31  ;;  %v2179_v6 = vadd.f32 %v2178_v58, %v2132_v45  ;;  %v2201_v49 = vmul.f32 %v2132_v45, %v2132_v45  ;;  %v2107_v34 = vpop.f32.mrf.mxu0  ;;  %v2656_v31 = vmul.f32 %v4922_v56, %v4922_v56 }
 0x1c5   : > { %v2056_v15 = vpop.f32.mrf.mxu3  ;;  %v4941_v7 = vpop.f32.mrf.mxu1  ;;  %v2658_v45 = vmul.f32 %v4931_v53, %v4931_v53 }
 0x1c6   : > { %3764 = vst [vmem:[%s4911_s18 + $0x18] sm:$0xff] %v3653_v48   ;;  %v2216_v13 = vadd.f32 %v2215_v46, %v2201_v49  ;;  %v2057_v44 = vadd.f32 %v2056_v15, %v2007_v39  ;;  %v3698_v1 = vpack.c.bf16 %v4941_v7, %v4937_v32  ;;  %v2671_v25 = vadd.f32 %v4919_v18, %v2656_v31 }
 0x1c8   : > { %v2106_v11 = vadd.f32 %v2105_v10, %v2057_v44  ;;  %3772 = vst [vmem:[%s4906_s17 + $0x20] sm:$0xff] %v3698_v1   ;;  %v2672_v39 = vadd.f32 %v2671_v25, %v2657_v51 }
 0x1ca   : > { %v2133_v40 = vadd.f32 %v2106_v11, %v4843_v28  ;;  %v2009_v2 = vpop.f32.mrf.mxu2  ;;  %v2673_v44 = vadd.f32 %v2672_v39, %v2658_v45 }
 0x1cc   : > { %v2180_v42 = vadd.f32 %v2179_v6, %v2133_v40  ;;  %v2202_v54 = vmul.f32 %v2133_v40, %v2133_v40  ;;  %v2110_v60 = vpop.f32.mrf.mxu0 }
 0x1cd   : > { %v2058_v33 = vpop.f32.mrf.mxu3  ;;  %v4947_v59 = vpop.f32.mrf.mxu1 }
 0x1ce   : > { %v2217_v12 = vadd.f32 %v2216_v13, %v2202_v54  ;;  %v2059_v5 = vadd.f32 %v2058_v33, %v2009_v2 }
 0x1d0   : > { %v2108_v17 = vadd.f32 %v2107_v34, %v2059_v5  ;;  %v2660_v34 = vmul.f32 %v4941_v7, %v4941_v7 }
 0x1d2   : > { %v2134_v23 = vadd.f32 %v2108_v17, %v4856_v62  ;;  %v2012_v43 = vpop.f32.mrf.mxu2 }
 0x1d4   : > { %v3658_v47 = vpack.c.bf16 %v2134_v23, %v2133_v40  ;;  %v2181_v14 = vadd.f32 %v2180_v42, %v2134_v23  ;;  %v2203_v21 = vmul.f32 %v2134_v23, %v2134_v23  ;;  %v2112_v26 = vpop.f32.mrf.mxu0  ;;  %v2661_v40 = vmul.f32 %v4947_v59, %v4947_v59 }
 0x1d5   : > { %v2061_v28 = vpop.f32.mrf.mxu3  ;;  %v2585_v30 = vpop.f32.mrf.mxu1 }
 0x1d6   : > { %3765 = vst [vmem:[%s4911_s18 + $0x20] sm:$0xff] %v3658_v47   ;;  %v2218_v20 = vadd.f32 %v2217_v12, %v2203_v21  ;;  %v2062_v50 = vadd.f32 %v2061_v28, %v2012_v43  ;;  %v3703_v16 = vpack.c.bf16 %v2585_v30, %v4947_v59  ;;  %v2662_v5 = vmul.f32 %v2585_v30, %v2585_v30 }
 0x1d8   : > { %v2111_v24 = vadd.f32 %v2110_v60, %v2062_v50  ;;  %3773 = vst [vmem:[%s4906_s17 + $0x28] sm:$0xff] %v3703_v16  }
 0x1da   : > { %v2135_v19 = vadd.f32 %v2111_v24, %v4870_v57  ;;  %v2014_v3 = vpop.f32.mrf.mxu2  ;;  %v2634_v57 = vadd.f32 %v4916_v52, %v4922_v56  ;;  %v2659_v52 = vmul.f32 %v4937_v32, %v4937_v32 }
 0x1dc   : > { %v2182_v55 = vadd.f32 %v2181_v14, %v2135_v19  ;;  %v2204_v8 = vmul.f32 %v2135_v19, %v2135_v19  ;;  %v2115_v58 = vpop.f32.mrf.mxu0  ;;  %v2674_v1 = vadd.f32 %v2673_v44, %v2659_v52 }
 0x1dd   : > { %v2063_v62 = vpop.f32.mrf.mxu3  ;;  %v2588_v36 = vpop.f32.mrf.mxu1 }
 0x1de   : > { %v2219_v22 = vadd.f32 %v2218_v20, %v2204_v8  ;;  %v2064_v27 = vadd.f32 %v2063_v62, %v2014_v3  ;;  %v2675_v12 = vadd.f32 %v2674_v1, %v2660_v34  ;;  %v2663_v47 = vmul.f32 %v2588_v36, %v2588_v36 }
 0x1e0   : > { %v2113_v9 = vadd.f32 %v2112_v26, %v2064_v27  ;;  %v2676_v23 = vadd.f32 %v2675_v12, %v2661_v40 }
 0x1e2   : > { %v2136_v63 = vadd.f32 %v2113_v9, %v4880_v29  ;;  %v2017_v10 = vpop.f32.mrf.mxu2  ;;  %v2635_v29 = vadd.f32 %v2634_v57, %v4927_v0  ;;  %v2677_v43 = vadd.f32 %v2676_v23, %v2662_v5 }
 0x1e4   : > { %v3663_v35 = vpack.c.bf16 %v2136_v63, %v2135_v19  ;;  %v2183_v46 = vadd.f32 %v2182_v55, %v2136_v63  ;;  %v2205_v38 = vmul.f32 %v2136_v63, %v2136_v63  ;;  %v2636_v15 = vadd.f32 %v2635_v29, %v4931_v53  ;;  %v2117_v42 = vpop.f32.mrf.mxu0 }
 0x1e5   : > { %v2066_v48 = vpop.f32.mrf.mxu3  ;;  %v2590_v56 = vpop.f32.mrf.mxu1 }
 0x1e6   : > { %3766 = vst [vmem:[%s4911_s18 + $0x28] sm:$0xff] %v3663_v35   ;;  %v2220_v6 = vadd.f32 %v2219_v22, %v2205_v38  ;;  %v2067_v49 = vadd.f32 %v2066_v48, %v2017_v10  ;;  %v3708_v18 = vpack.c.bf16 %v2590_v56, %v2588_v36  ;;  %v2637_v0 = vadd.f32 %v2636_v15, %v4937_v32 }
 0x1e7   : > { %v2664_v28 = vmul.f32 %v2590_v56, %v2590_v56 }
 0x1e8   : > { %v2116_v13 = vadd.f32 %v2115_v58, %v2067_v49  ;;  %3774 = vst [vmem:[%s4906_s17 + $0x30] sm:$0xff] %v3708_v18   ;;  %v2638_v53 = vadd.f32 %v2637_v0, %v4941_v7 }
 0x1ea   : > { %v2137_v11 = vadd.f32 %v2116_v13, %v4888_v4  ;;  %v2019_v33 = vpop.f32.mrf.mxu2  ;;  %v2639_v4 = vadd.f32 %v2638_v53, %v4947_v59  ;;  %v2678_v59 = vadd.f32 %v2677_v43, %v2663_v47 }
 0x1ec   : > { %v2184_v54 = vadd.f32 %v2183_v46, %v2137_v11  ;;  %v2206_v2 = vmul.f32 %v2137_v11, %v2137_v11  ;;  %v2640_v7 = vadd.f32 %v2639_v4, %v2585_v30  ;;  %v2679_v8 = vadd.f32 %v2678_v59, %v2664_v28  ;;  %v2120_v3 = vpop.f32.mrf.mxu0 }
 0x1ed   : > { %v2068_v32 = vpop.f32.mrf.mxu3  ;;  %v2593_v14 = vpop.f32.mrf.mxu1 }
 0x1ee   : > { %v2221_v60 = vadd.f32 %v2220_v6, %v2206_v2  ;;  %v2069_v17 = vadd.f32 %v2068_v32, %v2019_v33  ;;  %v2641_v20 = vadd.f32 %v2640_v7, %v2588_v36  ;;  %v2665_v26 = vmul.f32 %v2593_v14, %v2593_v14 }
 0x1f0   : > { %v2118_v21 = vadd.f32 %v2117_v42, %v2069_v17  ;;  %v2642_v24 = vadd.f32 %v2641_v20, %v2590_v56  ;;  %v2680_v36 = vadd.f32 %v2679_v8, %v2665_v26 }
 0x1f2   : > { %v2138_v50 = vadd.f32 %v2118_v21, %v4894_v37  ;;  %v2022_v55 = vpop.f32.mrf.mxu2  ;;  %v2643_v22 = vadd.f32 %v2642_v24, %v2593_v14 }
 0x1f4   : > { %v3668_v30 = vpack.c.bf16 %v2138_v50, %v2137_v11  ;;  %v2185_v16 = vadd.f32 %v2184_v54, %v2138_v50  ;;  %v2207_v19 = vmul.f32 %v2138_v50, %v2138_v50 }
 0x1f5   : > { %v2071_v62 = vpop.f32.mrf.mxu3  ;;  %v2595_v9 = vpop.f32.mrf.mxu1 }
 0x1f6   : > { %3767 = vst [vmem:[%s4911_s18 + $0x30] sm:$0xff] %v3668_v30   ;;  %v2222_v37 = vadd.f32 %v2221_v60, %v2207_v19  ;;  %v2072_v27 = vadd.f32 %v2071_v62, %v2022_v55  ;;  %v3713_v58 = vpack.c.bf16 %v2595_v9, %v2593_v14  ;;  %v2644_v63 = vadd.f32 %v2643_v22, %v2595_v9 }
 0x1f7   : > { %v2666_v51 = vmul.f32 %v2595_v9, %v2595_v9 }
 0x1f8   : > { %v2121_v31 = vadd.f32 %v2120_v3, %v2072_v27  ;;  %3775 = vst [vmem:[%s4906_s17 + $0x38] sm:$0xff] %v3713_v58   ;;  %v2645_v35 = vrot.slane %v2644_v63, 4 }
 0x1f9   : > { %v2681_v46 = vadd.f32 %v2680_v36, %v2666_v51 }
 0x1fa   : > { %v2139_v57 = vadd.f32 %v2121_v31, %v4897_v41 }
 0x1fb   : > { %3944 = shalt.err (!%p3941_p6)
}
 0x1fc   : > { %s4105_s24 = smov 64   ;;  %s4106_s17 = smov 4   ;;  %v2186_v41 = vadd.f32 %v2185_v16, %v2139_v57  ;;  %v2208_v38 = vmul.f32 %v2139_v57, %v2139_v57  ;;  %v2646_v10 = vadd.f32 %v2645_v35, %v2644_v63  ;;  %v2682_v25 = vrot.slane %v2681_v46, 4  ;;  %v2024_v45 = vpop.f32.mrf.mxu2  ;;  %v2122_v52 = vpop.f32.mrf.mxu0 }
 0x1fd   : > { %3794 = dma.vmem_to_hbm [thread:$0]  (%p4195_p3), %s2742_s19, 1024, %s2744_s20, %s5133_s12, %s4105_s24, %s4105_s24, %s4106_s17   ;;  %v2073_v48 = vpop.f32.mrf.mxu3  ;;  %vm2231_vm5 = vcmask 1040384  }
 0x1fe   : > { %s5135_s0 = sshll.u32 %s4999_s8, 1  ;;  %v2223_v29 = vadd.f32 %v2222_v37, %v2208_v38  ;;  %v2647_v6 = vrot.slane %v2646_v10, 2  ;;  %v2683_v49 = vadd.f32 %v2682_v25, %v2681_v46  ;;  %v2074_v39 = vadd.f32 %v2073_v48, %v2024_v45  ;;  %s5149_s1 = sshll.u32 %s4979_s9, 2 }
 0x1ff   : > { %s2720_s29 = scalar_lea.hbm %s5124_s3, %s5149_s1  ;;  %s5134_s19 = sshll.u32 %s4901_s13, 1 }
 0x200   : > { %v2648_v56 = vadd.f32 %v2647_v6, %v2646_v10  ;;  %v2684_v15 = vrot.slane %v2683_v49, 2  ;;  %v2123_v13 = vadd.f32 %v2122_v52, %v2074_v39  ;;  %s2774_s14 = scalar_lea.hbm %s5127_s6, %s5135_s0  ;;  %s2721_s25 = sshll.u32 %s4911_s18, 4  ;;  %s2722_s25 = int_to_ptr.vmem [resolvable:$true] %s2721_s25 }
 0x201   : > { %s2723_s12 = sshll.u32 %s2720_s29, 4  ;;  %s5033_s9 = scalar_lea.vmem [#allocation7], %s5134_s19  ;;  %s2724_s12 = int_to_ptr.hbm [resolvable:$true] %s2723_s12 }
 0x202   : > { %v2649_v18 = vrot.slane %v2648_v56, 1  ;;  %v2685_v44 = vadd.f32 %v2684_v15, %v2683_v49  ;;  %v2140_v34 = vadd.f32 %v2123_v13, %v4903_v61  ;;  %s2776_s1 = sshll.u32 %s5033_s9, 4  ;;  %s2778_s2 = sshll.u32 %s2774_s14, 4  ;;  %s5037_s1 = int_to_ptr.vmem [resolvable:$true] %s2776_s1  ;;  %s5039_s2 = int_to_ptr.hbm [resolvable:$true] %s2778_s2 }
 0x203   : > { %s2691_s7 = scalar_lea.sflag [#allocation3], %s4901_s13  ;;  %s3959_s29 = sshra.s32 %s2724_s12, 4  ;;  %s3960_s29 = int_to_ptr.hbm [resolvable:$true] %s3959_s29 }
 0x204   : > { %v2686_v0 = vrot.slane %v2685_v44, 1  ;;  %v3673_v11 = vpack.c.bf16 %v2140_v34, %v2139_v57  ;;  %v2187_v1 = vadd.f32 %v2186_v41, %v2140_v34  ;;  %v2209_v40 = vmul.f32 %v2140_v34, %v2140_v34  ;;  %s3961_s20 = scalar_lea.hbm %s3960_s29, 64  ;;  %s3965_s19 = scalar_lea.hbm %s5124_s3, 256 }
 0x205   : > { %v2650_v42 = vadd.f32 %v2649_v18, %v2648_v56  ;;  %p3962_p7 = scmp.ne.s32.totalorder %s3960_s29, %s3961_s20  ;;  %p3966_p11 = scmp.lt.s32.totalorder %s3960_s29, %s5124_s3 }
 0x206   : > { %3768 = vst [vmem:[%s4911_s18 + $0x38] sm:$0xff] %v3673_v11   ;;  %v2188_v53 = vrot.slane %v2187_v1, 4  ;;  %v2687_v54 = vadd.f32 %v2686_v0, %v2685_v44  ;;  %v2224_v61 = vadd.f32 %v2223_v29, %v2209_v40  ;;  %p3967_p12 = scmp.lt.s32.totalorder %s3965_s19, %s3961_s20 }
 0x207   : > { %p3963_p9 = pnand %p3962_p7, %p4195_p3 }
 0x208   : > { %p3968_p13 = por %p3967_p12, %p3966_p11 }
 0x209   : > { %p3964_p10 = pneg %p3963_p9 }
 0x20b   : > { %p3969_p0 = pnand %p3968_p13, %p3964_p10 }
 0x20d   : > { %3972 = shalt.err (!%p3969_p0)
}
 0x20e   : > { %3793 = dma.vmem_to_hbm [thread:$0]  (%p4195_p3), %s2722_s25, 1024, %s2724_s12, %s2691_s7, %s4105_s24, %s4105_s24, %s4106_s17   ;;  %v2189_v2 = vadd.f32 %v2188_v53, %v2187_v1  ;;  %v2688_v33 = vsel %vm2231_vm5, %v2650_v42, %v2687_v54  ;;  %v2225_v12 = vrot.slane %v2224_v61, 4 }
 0x20f   : > { %2689 = vst [vmem:[%s5033_s9] sm:$0x3] %v2688_v33  ;;  %s2706_s0 = scalar_lea.sflag [#allocation8], %s4901_s13  ;;  %s3987_s19 = sshra.s32 %s5039_s2, 4  ;;  %s3988_s19 = int_to_ptr.hbm [resolvable:$true] %s3987_s19 }
 0x210   : > { %v2190_v5 = vrot.slane %v2189_v2, 2  ;;  %s3989_s29 = scalar_lea.hbm %s3988_s19, 2  ;;  %s3993_s14 = scalar_lea.hbm %s5127_s6, 8 }
 0x211   : > { %p3990_p1 = scmp.ne.s32.totalorder %s3988_s19, %s3989_s29  ;;  %p3994_p5 = scmp.lt.s32.totalorder %s3988_s19, %s5127_s6 }
 0x212   : > { %p3995_p6 = scmp.lt.s32.totalorder %s3993_s14, %s3989_s29 }
 0x213   : > { %p3991_p2 = pnand %p3990_p1, %p4195_p3 }
 0x214   : > { %p3996_p7 = por %p3995_p6, %p3994_p5 }
 0x215   : > { %p3992_p4 = pneg %p3991_p2 }
 0x217   : > { %p3997_p9 = pnand %p3996_p7, %p3992_p4 }
 0x219   : > { %4000 = shalt.err (!%p3997_p9)
}
 0x21a   : > { %3796 = dma.vmem_to_hbm [thread:$0]  (%p4195_p3), %s5037_s1, 32, %s5039_s2, %s2706_s0   ;;  %v2226_v32 = vadd.f32 %v2225_v12, %v2224_v61  ;;  %v2191_v4 = vadd.f32 %v2190_v5, %v2189_v2 }
 0x21b   : > { %s5150_s24 = sshll.u32 %s4999_s8, 1  ;;  %s5151_s7 = sshll.u32 %s4901_s13, 1 }
 0x21c   : > { %v2227_v60 = vrot.slane %v2226_v32, 2  ;;  %s2758_s9 = scalar_lea.hbm %s5126_s5, %s5150_s24  ;;  %v2192_v17 = vrot.slane %v2191_v4, 1  ;;  %s285_s19 = scalar_lea.vmem [#allocation6], %s5151_s7 }
 0x21d   : > { %s2760_s29 = sshll.u32 %s285_s19, 4  ;;  %s2762_s20 = sshll.u32 %s2758_s9, 4  ;;  %s2761_s29 = int_to_ptr.vmem [resolvable:$true] %s2760_s29  ;;  %s2763_s20 = int_to_ptr.hbm [resolvable:$true] %s2762_s20 }
 0x21e   : > { %v2228_v23 = vadd.f32 %v2227_v60, %v2226_v32  ;;  %v2193_v14 = vadd.f32 %v2192_v17, %v2191_v4  ;;  %s4015_s8 = sshra.s32 %s2763_s20, 4  ;;  %s4021_s13 = scalar_lea.hbm %s5126_s5, 8  ;;  %s4016_s8 = int_to_ptr.hbm [resolvable:$true] %s4015_s8 }
 0x21f   : > { %s4017_s1 = scalar_lea.hbm %s4016_s8, 2  ;;  %p4022_p13 = scmp.lt.s32.totalorder %s4016_s8, %s5126_s5 }
 0x220   : > { %v2229_v47 = vrot.slane %v2228_v23, 1  ;;  %p4018_p10 = scmp.ne.s32.totalorder %s4016_s8, %s4017_s1  ;;  %p4023_p0 = scmp.lt.s32.totalorder %s4021_s13, %s4017_s1 }
 0x222   : > { %v2230_v7 = vadd.f32 %v2229_v47, %v2228_v23  ;;  %p4019_p11 = pnand %p4018_p10, %p4195_p3  ;;  %p4024_p1 = por %p4023_p0, %p4022_p13 }
 0x224   : > { %v2232_v21 = vsel %vm2231_vm5, %v2193_v14, %v2230_v7  ;;  %p4020_p12 = pneg %p4019_p11 }
 0x225   : > { %2233 = vst [vmem:[%s285_s19] sm:$0x3] %v2232_v21 }
 0x226   : > { %p4025_p2 = pnand %p4024_p1, %p4020_p12 }
 0x228   : > { %4028 = shalt.err (!%p4025_p2)
}
 0x229   : > { %s5152_s18 = scalar_lea.sflag [#allocation5], %s4991_s16 }
 0x22a   : > { %3795 = dma.vmem_to_hbm [thread:$0]  (%p4195_p3), %s2761_s29, 32, %s2763_s20, %s5152_s18  }
 0x22b PF: > { %p3814_p4 = scmp.ge.s32.totalorder %s4103_s28, 2  ;;  %s2790_s12 = sand.u32 1, %s4075_s21  }
 0x22c   : > { %s2791_s24 = scalar_lea.sflag [#allocation3], %s2790_s12 }
 0x22d   : > { %p3802_p5 = pnand %p3814_p4, %p4206_p8 }
 0x22f   : > { %p3803_p6 = pneg %p3802_p5 }
 0x231   : > { %4062 = dma.done.wait (%p3803_p6), %s2791_s24, 1024  }
 0x232   : > { %4064 = vsyncadd (%p3803_p6), %s2791_s24, 4294966272  ;;  %s5153_s17 = sadd.s32 4294967294, %s4103_s28  }
 0x233   : > { %s2800_s25 = sand.u32 1, %s5153_s17  }
 0x234   : > { %s2801_s9 = scalar_lea.sflag [#allocation5], %s2800_s25 }
 0x235   : > { %4066 = dma.done.wait (%p3803_p6), %s2801_s9, 1056  }
 0x236   : > { %4068 = vsyncadd (%p3803_p6), %s2801_s9, 4294966240  ;;  %s2821_s10 = scalar_lea.sflag [#allocation8], %s2790_s12 }
 0x237   : > { %4070 = dma.done.wait (%p3803_p6), %s2821_s10, 32  }
 0x238   : > { %4072 = vsyncadd (%p3803_p6), %s2821_s10, 4294967264  ;;  %s26_s28 = sadd.s32 1, %s4103_s28   ;;  %s5154_s11 = sld [smem:[#allocation12_spill]] }
 0x239   : > { %p23_p3 = scmp.ge.s32.totalorder %s26_s28, 6   ;;  %s5155_s16 = sld [smem:[#allocation13_spill]] }
 0x23a   : > { %s5156_s21 = smov %s4079_s22  ;;  %s5157_s22 = smov %s4083_s23 }
 0x23b   : > { %s5158_s23 = smov %s4215_s15  ;;  %s5159_s24 = smov %s4095_s26 }
 0x23c   : > { %s5160_s25 = smov %s4099_s27  ;;  %25 = sbr.rel (!%p23_p3) target bundleno = 13 (0xd), region = 121 }
 0x23e   : > { %s5161_s26 = smov %s5154_s11 }
 0x23f   : > { %s5162_s27 = smov %s5155_s16 }
 0x241   :  { %2827 = vsyncpa [#allocation3], 1 }
 0x242   :  { %2829 = vsyncpa [#allocation3 + $0x1], 1 }
 0x243   :  { %2830 = vsyncpa [#allocation5], 1 }
 0x244   :  { %2832 = vsyncpa [#allocation5 + $0x1], 1 }
 0x245   :  { %2833 = vsyncpa [#allocation8], 1 }
 0x246   :  { %2835 = vsyncpa [#allocation8 + $0x1], 1 }

</bundles_post_ra>
